<compile_context>
chip_gen: v6e
topology: v6e:2x2x1
jax: 0.10.0
libtpu: 0.0.40
codegen_flags: <defaults>
</compile_context>

<pallas_src>
import functools

import jax
import jax.numpy as jnp
from jax.experimental import pallas as pl
from jax.experimental.pallas import tpu as pltpu


# ---------------------------------------------------------------------------
# Fused ResBlock kernels (one batch element per grid step, channel-major)
# ---------------------------------------------------------------------------
def _res_block_kernel(x_ref, ws_ref, bs_ref, w0_ref, b0_ref, w1_ref, b1_ref,
                      w2_ref, b2_ref, o_ref, *, h, w):
    """down_sample=False path.

    x_ref : (1, Cin, h*w)   bf16   unpadded NCHW input, spatial flattened
    ws/bs : (Cout, Cin) bf16 / (Cout, 1) f32   folded 1x1 shortcut conv
    w0/b0 : (bnc, Cin)  / (bnc, 1)             1x1 conv0 (pad 1)
    w1/b1 : (bnc, 9*bnc)/ (bnc, 1)             3x3 conv1, taps flattened on K
    w2/b2 : (Cout, bnc) / (Cout, 1)            1x1 conv2
    o_ref : (1, Cout, h*w)  f32    channel-major (NCHW-flat) output
    """
    cin = x_ref.shape[1]
    bnc = w0_ref.shape[0]
    wp = w + 2                     # row stride of the zero-padded grid
    ell = h * wp - 2               # flat span covering every valid output pixel

    # Zero-padded (pad=1) flat input grid built in vregs: no HBM-side jnp.pad,
    # no extra activation round trip before the kernel.
    zedge = jnp.zeros((cin, wp + 1), jnp.bfloat16)
    zgap = jnp.zeros((cin, 2), jnp.bfloat16)
    pieces = [zedge]
    for i in range(h):   # TODO(synk): replace by halo'd spatial tiles at real sizes
        pieces.append(x_ref[0, :, i * w:(i + 1) * w])
        pieces.append(zgap if i + 1 < h else zedge)
    xpad = jnp.concatenate(pieces, axis=-1)             # (Cin, (h+2)*(w+2))

    # conv0: 1x1 (pad 1) evaluated ONCE over the whole padded grid.
    a = jnp.maximum(
        jnp.dot(w0_ref[...], xpad, preferred_element_type=jnp.float32)
        + b0_ref[...], 0.0).astype(jnp.bfloat16)        # (bnc, (h+2)*(w+2))

    # conv1: 3x3 (pad 0) = nine shifted flat views of `a`, each feeding a small
    # matmul, accumulated in f32 (shifted views instead of an im2col concat;
    # the lane shifts overlap the MXU work).
    w1 = w1_ref[...]
    acc = jnp.zeros((bnc, ell), jnp.float32)
    for kh in range(3):
        for kw in range(3):
            d = kh * wp + kw
            k0 = (kh * 3 + kw) * bnc
            acc = acc + jnp.dot(w1[:, k0:k0 + bnc], a[:, d:d + ell],
                                preferred_element_type=jnp.float32)
    b = jnp.maximum(acc + b1_ref[...], 0.0).astype(jnp.bfloat16)   # (bnc, ell)

    # conv2: 1x1.
    c = jnp.maximum(
        jnp.dot(w2_ref[...], b, preferred_element_type=jnp.float32)
        + b2_ref[...], 0.0)                             # (Cout, ell) f32

    # Shortcut: 1x1 conv of the unpadded input -> already (Cout, h*w) dense.
    s = jnp.maximum(
        jnp.dot(ws_ref[...], x_ref[0], preferred_element_type=jnp.float32)
        + bs_ref[...], 0.0)                             # (Cout, h*w)

    # Drop the two pad columns of each padded row, residual add, lane-dense
    # store (channel-major: no transpose needed).
    c_dense = jnp.concatenate([c[:, i * wp:i * wp + w] for i in range(h)],
                              axis=-1)                  # (Cout, h*w)
    o_ref[0] = (c_dense + s).astype(o_ref.dtype)


def _res_block_kernel_ds(xs_ref, pee_ref, peo_ref, poe_ref, poo_ref,
                         wds_ref, bds_ref, w0_ref, b0_ref, w1_ref, b1_ref,
                         w2_ref, b2_ref, o_ref, *, oh, ow):
    """down_sample=True path.

    xs_ref          : (1, Cin, (oh+2)*(ow+2)) bf16  pad-2 input pre-sampled with
                      stride 2 (xs[i,j] == x_pad2[2i,2j]) for the stride-2 conv0
    pee/peo/poe/poo : (1, Cin, (oh+1)*(ow+1)) bf16  row/col parity planes of the
                      pad-1 input for the stride-2 3x3 shortcut conv
    """
    cin = xs_ref.shape[1]
    bnc = w0_ref.shape[0]
    cout = wds_ref.shape[0]
    wp = ow + 2                    # conv0-grid row stride
    wq = ow + 1                    # parity-plane row stride
    ell = oh * wp - 2
    ells = (oh - 1) * wq + ow

    # Bottleneck: conv0 (stride 2 folded into the pre-sampled xs) -> conv1 -> conv2.
    a = jnp.maximum(
        jnp.dot(w0_ref[...], xs_ref[0], preferred_element_type=jnp.float32)
        + b0_ref[...], 0.0).astype(jnp.bfloat16)        # (bnc, (oh+2)*(ow+2))

    w1 = w1_ref[...]
    acc = jnp.zeros((bnc, ell), jnp.float32)
    for kh in range(3):
        for kw in range(3):
            d = kh * wp + kw
            k0 = (kh * 3 + kw) * bnc
            acc = acc + jnp.dot(w1[:, k0:k0 + bnc], a[:, d:d + ell],
                                preferred_element_type=jnp.float32)
    b = jnp.maximum(acc + b1_ref[...], 0.0).astype(jnp.bfloat16)   # (bnc, ell)
    c = jnp.maximum(
        jnp.dot(w2_ref[...], b, preferred_element_type=jnp.float32)
        + b2_ref[...], 0.0)                             # (Cout, ell)

    # Shortcut: 3x3 stride-2 conv accumulated from the four parity planes; the
    # window of tap (kh, kw) lives in the (kh%2, kw%2) plane at offset
    # (kh//2, kw//2).
    planes = ((pee_ref, peo_ref), (poe_ref, poo_ref))
    wds = wds_ref[...]                                  # (Cout, 9*Cin)
    sacc = jnp.zeros((cout, ells), jnp.float32)
    for kh in range(3):
        for kw in range(3):
            pr = planes[kh % 2][kw % 2]
            d = (kh // 2) * wq + (kw // 2)
            k0 = (kh * 3 + kw) * cin
            sacc = sacc + jnp.dot(wds[:, k0:k0 + cin], pr[0, :, d:d + ells],
                                  preferred_element_type=jnp.float32)
    s = jnp.maximum(sacc + bds_ref[...], 0.0)           # (Cout, ells)

    # Align the two flat layouts (row strides wp vs wq) row-by-row, residual
    # add, lane-dense channel-major store.
    o_ref[0] = jnp.concatenate(
        [c[:, i * wp:i * wp + ow] + s[:, i * wq:i * wq + ow]
         for i in range(oh)], axis=-1).astype(o_ref.dtype)


# ---------------------------------------------------------------------------
# Wrapper: parameter folding + pallas_call plumbing
# ---------------------------------------------------------------------------
def _fold(w_hwio, scale, bias):
    """Fold BN scale into the conv weight; produce channel-major operands:
    (Cout, KK*Cin) bf16 weight and (Cout, 1) f32 bias."""
    cout = w_hwio.shape[-1]
    wf = jnp.transpose((w_hwio * scale).reshape(-1, cout)).astype(jnp.bfloat16)
    bf = bias.reshape(cout, 1).astype(jnp.float32)
    # TODO(synk): pad the Cout / K dims to 128 (256 on v6e/v7x) multiples at
    # real channel counts to avoid partial MXU passes.
    return wf, bf


def res_block_forward(x_nchw, params, down_sample=False):
    """ResBlock forward: NCHW in / NCHW out, single fused Pallas kernel."""
    x = x_nchw.astype(jnp.bfloat16)          # bf16 activations: half the DMA bytes
    n, cin, h, w = x.shape
    cout = params["conv2"][0].shape[-1]

    w0, b0 = _fold(*params["conv0"])
    w1, b1 = _fold(*params["conv1"])
    w2, b2 = _fold(*params["conv2"])

    if not down_sample:
        oh, ow = h, w
        ws, bs = _fold(*params["conv_1x1"])
        data = (x.reshape(n, cin, h * w),)   # trailing reshape: layout-free
        data_specs = [pl.BlockSpec((1, cin, h * w), lambda i: (i, 0, 0))]
        kernel = functools.partial(_res_block_kernel, h=h, w=w)
    else:
        oh, ow = h // 2, w // 2
        ws, bs = _fold(*params["conv_down_sample"])
        # TODO(synk): do the stride-2 / parity selection in-kernel (strided
        # lane loads) so only the raw bf16 input has to be shipped.
        xs = jnp.pad(x[:, :, ::2, ::2],
                     ((0, 0), (0, 0), (1, 1), (1, 1))).reshape(
                         n, cin, (oh + 2) * (ow + 2))
        xp1 = jnp.pad(x, ((0, 0), (0, 0), (1, 1), (1, 1)))
        planes = tuple(
            xp1[:, :, rp::2, cp::2].reshape(n, cin, (oh + 1) * (ow + 1))
            for rp in (0, 1) for cp in (0, 1))
        data = (xs,) + planes
        data_specs = (
            [pl.BlockSpec((1, cin, (oh + 2) * (ow + 2)), lambda i: (i, 0, 0))]
            + [pl.BlockSpec((1, cin, (oh + 1) * (ow + 1)),
                            lambda i: (i, 0, 0))] * 4)
        kernel = functools.partial(_res_block_kernel_ds, oh=oh, ow=ow)

    weights = (ws, bs, w0, b0, w1, b1, w2, b2)
    weight_specs = [pl.BlockSpec(t.shape, lambda i: (0, 0)) for t in weights]
    p = oh * ow

    out = pl.pallas_call(
        kernel,
        out_shape=jax.ShapeDtypeStruct((n, cout, p), jnp.float32),
        grid=(n,),
        in_specs=data_specs + weight_specs,
        out_specs=pl.BlockSpec((1, cout, p), lambda i: (i, 0, 0)),
        compiler_params=pltpu.CompilerParams(
            dimension_semantics=("parallel",),
            vmem_limit_bytes=32 * 1024 * 1024),
    )(*data, *weights)
    # Output is already channel-major; restore the spatial dims (NCHW).
    return out.reshape(n, cout, oh, ow)


# ---------------------------------------------------------------------------
# Pure-JAX reference (f32, lax.conv) -- same semantics as the PyTorch module
# ---------------------------------------------------------------------------
def _conv_bn_relu_ref(x, w_hwio, scale, bias, stride, padding):
    y = jax.lax.conv_general_dilated(
        x, w_hwio, (stride, stride),
        [(padding, padding), (padding, padding)],
        dimension_numbers=("NHWC", "HWIO", "NHWC"))
    return jnp.maximum(y * scale + bias, 0.0)


def res_block_ref(x_nchw, params, down_sample=False):
    x = jnp.transpose(x_nchw, (0, 2, 3, 1))
    if down_sample:
        b1 = _conv_bn_relu_ref(x, *params["conv_down_sample"], 2, 1)
        a = _conv_bn_relu_ref(x, *params["conv0"], 2, 2)
    else:
        b1 = _conv_bn_relu_ref(x, *params["conv_1x1"], 1, 0)
        a = _conv_bn_relu_ref(x, *params["conv0"], 1, 1)
    b = _conv_bn_relu_ref(a, *params["conv1"], 1, 0)
    c = _conv_bn_relu_ref(b, *params["conv2"], 1, 0) + b1
    return jnp.transpose(c, (0, 3, 1, 2))


# ---------------------------------------------------------------------------
# Deterministic parameters (conv bias + eval-mode BN folded to scale/bias)
# ---------------------------------------------------------------------------
def make_conv_bn_params(key, cin, cout, k):
    kw_, kb_, kg_, kbe_, km_, kv_ = jax.random.split(key, 6)
    w = 0.1 * jax.random.normal(kw_, (k, k, cin, cout), jnp.float32)   # HWIO
    conv_b = 0.1 * jax.random.normal(kb_, (cout,), jnp.float32)
    gamma = 1.0 + 0.1 * jax.random.normal(kg_, (cout,), jnp.float32)
    beta = 0.1 * jax.random.normal(kbe_, (cout,), jnp.float32)
    r_mean = 0.1 * jax.random.normal(km_, (cout,), jnp.float32)
    r_var = 0.5 + jnp.abs(jax.random.normal(kv_, (cout,), jnp.float32))
    eps = 1e-5
    s = gamma / jnp.sqrt(r_var + eps)            # BN eval-mode fold
    b = (conv_b - r_mean) * s + beta
    return w, s, b


if __name__ == "__main__":
    key = jax.random.PRNGKey(0)
    N, C_in, H, W = 2, 4, 16, 16
    C_out = 8
    bnc = C_out // 4

    keys = jax.random.split(key, 6)
    x = jax.random.normal(keys[0], (N, C_in, H, W), jnp.float32)

    params = {
        "conv_1x1":         make_conv_bn_params(keys[1], C_in, C_out, 1),
        "conv_down_sample": make_conv_bn_params(keys[2], C_in, C_out, 3),
        "conv0":            make_conv_bn_params(keys[3], C_in, bnc, 1),
        "conv1":            make_conv_bn_params(keys[4], bnc, bnc, 3),
        "conv2":            make_conv_bn_params(keys[5], bnc, C_out, 1),
    }

    # down_sample=False (module default)
    out = res_block_forward(x, params, down_sample=False)
    jax.block_until_ready(out)
    ref = res_block_ref(x, params, down_sample=False)
    assert out.shape == (N, C_out, H, W), out.shape
    err = float(jnp.max(jnp.abs(out - ref)))
    rel = err / (float(jnp.max(jnp.abs(ref))) + 1e-6)
    assert err < 5e-2 and rel < 5e-2, (err, rel)   # bf16 MXU operands, f32 acc

    # down_sample=True path
    out2 = res_block_forward(x, params, down_sample=True)
    jax.block_until_ready(out2)
    ref2 = res_block_ref(x, params, down_sample=True)
    assert out2.shape == (N, C_out, H // 2, W // 2), out2.shape
    err2 = float(jnp.max(jnp.abs(out2 - ref2)))
    rel2 = err2 / (float(jnp.max(jnp.abs(ref2))) + 1e-6)
    assert err2 < 5e-2 and rel2 < 5e-2, (err2, rel2)

    print("KERNEL_OK")
</pallas_src>

<mosaic_0001>
module attributes {stable_mosaic.version = 11 : i64} {
  func.func @_res_block_kernel(%arg0: i32, %arg1: memref<1x4x256xbf16, #tpu.memory_space<vmem>>, %arg2: memref<8x4xbf16, #tpu.memory_space<vmem>>, %arg3: memref<8x1xf32, #tpu.memory_space<vmem>>, %arg4: memref<2x4xbf16, #tpu.memory_space<vmem>>, %arg5: memref<2x1xf32, #tpu.memory_space<vmem>>, %arg6: memref<2x18xbf16, #tpu.memory_space<vmem>>, %arg7: memref<2x1xf32, #tpu.memory_space<vmem>>, %arg8: memref<8x2xbf16, #tpu.memory_space<vmem>>, %arg9: memref<8x1xf32, #tpu.memory_space<vmem>>, %arg10: memref<1x8x256xf32, #tpu.memory_space<vmem>>) attributes {dimension_semantics = [#tpu.dimension_semantics<parallel>], iteration_bounds = array<i64: 2>, scalar_prefetch = 0 : i64, scratch_operands = 0 : i64, tpu.core_type = #tpu.core_type<tc>, window_params = [{transform_indices = @transform_0, window_bounds = array<i64: 1, 4, 256>}, {pipeline_mode = #tpu.pipeline_mode<synchronous>, transform_indices = @transform_1, window_bounds = array<i64: 8, 4>}, {pipeline_mode = #tpu.pipeline_mode<synchronous>, transform_indices = @transform_2, window_bounds = array<i64: 8, 1>}, {pipeline_mode = #tpu.pipeline_mode<synchronous>, transform_indices = @transform_3, window_bounds = array<i64: 2, 4>}, {pipeline_mode = #tpu.pipeline_mode<synchronous>, transform_indices = @transform_4, window_bounds = array<i64: 2, 1>}, {pipeline_mode = #tpu.pipeline_mode<synchronous>, transform_indices = @transform_5, window_bounds = array<i64: 2, 18>}, {pipeline_mode = #tpu.pipeline_mode<synchronous>, transform_indices = @transform_6, window_bounds = array<i64: 2, 1>}, {pipeline_mode = #tpu.pipeline_mode<synchronous>, transform_indices = @transform_7, window_bounds = array<i64: 8, 2>}, {pipeline_mode = #tpu.pipeline_mode<synchronous>, transform_indices = @transform_8, window_bounds = array<i64: 8, 1>}, {transform_indices = @transform_9, window_bounds = array<i64: 1, 8, 256>}]} {
    %cst = arith.constant 0.000000e+00 : bf16
    %0 = vector.broadcast %cst : bf16 to vector<4x19xbf16>
    %cst_0 = arith.constant 0.000000e+00 : bf16
    %1 = vector.broadcast %cst_0 : bf16 to vector<4x2xbf16>
    %c0 = arith.constant 0 : index
    %c0_1 = arith.constant 0 : index
    %c0_2 = arith.constant 0 : index
    %2 = vector.load %arg1[%c0, %c0_1, %c0_2] : memref<1x4x256xbf16, #tpu.memory_space<vmem>>, vector<1x4x16xbf16>
    %3 = vector.shape_cast %2 : vector<1x4x16xbf16> to vector<4x16xbf16>
    %c0_3 = arith.constant 0 : index
    %c0_4 = arith.constant 0 : index
    %c16 = arith.constant 16 : index
    %4 = vector.load %arg1[%c0_3, %c0_4, %c16] : memref<1x4x256xbf16, #tpu.memory_space<vmem>>, vector<1x4x16xbf16>
    %5 = vector.shape_cast %4 : vector<1x4x16xbf16> to vector<4x16xbf16>
    %c0_5 = arith.constant 0 : index
    %c0_6 = arith.constant 0 : index
    %c32 = arith.constant 32 : index
    %6 = vector.load %arg1[%c0_5, %c0_6, %c32] : memref<1x4x256xbf16, #tpu.memory_space<vmem>>, vector<1x4x16xbf16>
    %7 = vector.shape_cast %6 : vector<1x4x16xbf16> to vector<4x16xbf16>
    %c0_7 = arith.constant 0 : index
    %c0_8 = arith.constant 0 : index
    %c48 = arith.constant 48 : index
    %8 = vector.load %arg1[%c0_7, %c0_8, %c48] : memref<1x4x256xbf16, #tpu.memory_space<vmem>>, vector<1x4x16xbf16>
    %9 = vector.shape_cast %8 : vector<1x4x16xbf16> to vector<4x16xbf16>
    %c0_9 = arith.constant 0 : index
    %c0_10 = arith.constant 0 : index
    %c64 = arith.constant 64 : index
    %10 = vector.load %arg1[%c0_9, %c0_10, %c64] : memref<1x4x256xbf16, #tpu.memory_space<vmem>>, vector<1x4x16xbf16>
    %11 = vector.shape_cast %10 : vector<1x4x16xbf16> to vector<4x16xbf16>
    %c0_11 = arith.constant 0 : index
    %c0_12 = arith.constant 0 : index
    %c80 = arith.constant 80 : index
    %12 = vector.load %arg1[%c0_11, %c0_12, %c80] : memref<1x4x256xbf16, #tpu.memory_space<vmem>>, vector<1x4x16xbf16>
    %13 = vector.shape_cast %12 : vector<1x4x16xbf16> to vector<4x16xbf16>
    %c0_13 = arith.constant 0 : index
    %c0_14 = arith.constant 0 : index
    %c96 = arith.constant 96 : index
    %14 = vector.load %arg1[%c0_13, %c0_14, %c96] : memref<1x4x256xbf16, #tpu.memory_space<vmem>>, vector<1x4x16xbf16>
    %15 = vector.shape_cast %14 : vector<1x4x16xbf16> to vector<4x16xbf16>
    %c0_15 = arith.constant 0 : index
    %c0_16 = arith.constant 0 : index
    %c112 = arith.constant 112 : index
    %16 = vector.load %arg1[%c0_15, %c0_16, %c112] : memref<1x4x256xbf16, #tpu.memory_space<vmem>>, vector<1x4x16xbf16>
    %17 = vector.shape_cast %16 : vector<1x4x16xbf16> to vector<4x16xbf16>
    %c0_17 = arith.constant 0 : index
    %c0_18 = arith.constant 0 : index
    %c128 = arith.constant 128 : index
    %18 = vector.load %arg1[%c0_17, %c0_18, %c128] : memref<1x4x256xbf16, #tpu.memory_space<vmem>>, vector<1x4x16xbf16>
    %19 = vector.shape_cast %18 : vector<1x4x16xbf16> to vector<4x16xbf16>
    %c0_19 = arith.constant 0 : index
    %c0_20 = arith.constant 0 : index
    %c144 = arith.constant 144 : index
    %20 = vector.load %arg1[%c0_19, %c0_20, %c144] : memref<1x4x256xbf16, #tpu.memory_space<vmem>>, vector<1x4x16xbf16>
    %21 = vector.shape_cast %20 : vector<1x4x16xbf16> to vector<4x16xbf16>
    %c0_21 = arith.constant 0 : index
    %c0_22 = arith.constant 0 : index
    %c160 = arith.constant 160 : index
    %22 = vector.load %arg1[%c0_21, %c0_22, %c160] : memref<1x4x256xbf16, #tpu.memory_space<vmem>>, vector<1x4x16xbf16>
    %23 = vector.shape_cast %22 : vector<1x4x16xbf16> to vector<4x16xbf16>
    %c0_23 = arith.constant 0 : index
    %c0_24 = arith.constant 0 : index
    %c176 = arith.constant 176 : index
    %24 = vector.load %arg1[%c0_23, %c0_24, %c176] : memref<1x4x256xbf16, #tpu.memory_space<vmem>>, vector<1x4x16xbf16>
    %25 = vector.shape_cast %24 : vector<1x4x16xbf16> to vector<4x16xbf16>
    %c0_25 = arith.constant 0 : index
    %c0_26 = arith.constant 0 : index
    %c192 = arith.constant 192 : index
    %26 = vector.load %arg1[%c0_25, %c0_26, %c192] : memref<1x4x256xbf16, #tpu.memory_space<vmem>>, vector<1x4x16xbf16>
    %27 = vector.shape_cast %26 : vector<1x4x16xbf16> to vector<4x16xbf16>
    %c0_27 = arith.constant 0 : index
    %c0_28 = arith.constant 0 : index
    %c208 = arith.constant 208 : index
    %28 = vector.load %arg1[%c0_27, %c0_28, %c208] : memref<1x4x256xbf16, #tpu.memory_space<vmem>>, vector<1x4x16xbf16>
    %29 = vector.shape_cast %28 : vector<1x4x16xbf16> to vector<4x16xbf16>
    %c0_29 = arith.constant 0 : index
    %c0_30 = arith.constant 0 : index
    %c224 = arith.constant 224 : index
    %30 = vector.load %arg1[%c0_29, %c0_30, %c224] : memref<1x4x256xbf16, #tpu.memory_space<vmem>>, vector<1x4x16xbf16>
    %31 = vector.shape_cast %30 : vector<1x4x16xbf16> to vector<4x16xbf16>
    %c0_31 = arith.constant 0 : index
    %c0_32 = arith.constant 0 : index
    %c240 = arith.constant 240 : index
    %32 = vector.load %arg1[%c0_31, %c0_32, %c240] : memref<1x4x256xbf16, #tpu.memory_space<vmem>>, vector<1x4x16xbf16>
    %33 = vector.shape_cast %32 : vector<1x4x16xbf16> to vector<4x16xbf16>
    %34 = tpu.concatenate %0, %3, %1, %5, %1, %7, %1, %9, %1, %11, %1, %13, %1, %15, %1, %17 in 1 : vector<4x19xbf16>, vector<4x16xbf16>, vector<4x2xbf16>, vector<4x16xbf16>, vector<4x2xbf16>, vector<4x16xbf16>, vector<4x2xbf16>, vector<4x16xbf16>, vector<4x2xbf16>, vector<4x16xbf16>, vector<4x2xbf16>, vector<4x16xbf16>, vector<4x2xbf16>, vector<4x16xbf16>, vector<4x2xbf16>, vector<4x16xbf16> -> vector<4x161xbf16>
    %35 = tpu.concatenate %1, %19, %1, %21, %1, %23, %1, %25, %1, %27, %1, %29, %1, %31, %1, %33 in 1 : vector<4x2xbf16>, vector<4x16xbf16>, vector<4x2xbf16>, vector<4x16xbf16>, vector<4x2xbf16>, vector<4x16xbf16>, vector<4x2xbf16>, vector<4x16xbf16>, vector<4x2xbf16>, vector<4x16xbf16>, vector<4x2xbf16>, vector<4x16xbf16>, vector<4x2xbf16>, vector<4x16xbf16>, vector<4x2xbf16>, vector<4x16xbf16> -> vector<4x144xbf16>
    %36 = tpu.concatenate %34, %35, %0 in 1 : vector<4x161xbf16>, vector<4x144xbf16>, vector<4x19xbf16> -> vector<4x324xbf16>
    %c0_33 = arith.constant 0 : index
    %c0_34 = arith.constant 0 : index
    %37 = vector.load %arg4[%c0_33, %c0_34] : memref<2x4xbf16, #tpu.memory_space<vmem>>, vector<2x4xbf16>
    %cst_35 = arith.constant dense<0.000000e+00> : vector<2x324xf32>
    %38 = tpu.matmul %37, %36, %cst_35 {dimension_numbers = #tpu.dot_dimension_numbers<[1], [0], [0], [1], [0, 0, 1, 1], [], []>} : vector<2x4xbf16>, vector<4x324xbf16>, vector<2x324xf32> -> vector<2x324xf32>
    %c0_36 = arith.constant 0 : index
    %c0_37 = arith.constant 0 : index
    %39 = vector.load %arg5[%c0_36, %c0_37] : memref<2x1xf32, #tpu.memory_space<vmem>>, vector<2x1xf32>
    %40 = vector.broadcast %39 : vector<2x1xf32> to vector<2x324xf32>
    %41 = arith.addf %38, %40 : vector<2x324xf32>
    %cst_38 = arith.constant 0.000000e+00 : f32
    %42 = vector.broadcast %cst_38 : f32 to vector<2x324xf32>
    %43 = arith.maximumf %41, %42 : vector<2x324xf32>
    %44 = arith.truncf %43 : vector<2x324xf32> to vector<2x324xbf16>
    %c0_39 = arith.constant 0 : index
    %c0_40 = arith.constant 0 : index
    %45 = vector.load %arg6[%c0_39, %c0_40] : memref<2x18xbf16, #tpu.memory_space<vmem>>, vector<2x18xbf16>
    %cst_41 = arith.constant 0.000000e+00 : f32
    %46 = vector.broadcast %cst_41 : f32 to vector<2x286xf32>
    %47 = vector.extract_strided_slice %45 {offsets = [0, 0], sizes = [2, 2], strides = [1, 1]} : vector<2x18xbf16> to vector<2x2xbf16>
    %48 = vector.extract_strided_slice %44 {offsets = [0, 0], sizes = [2, 286], strides = [1, 1]} : vector<2x324xbf16> to vector<2x286xbf16>
    %cst_42 = arith.constant dense<0.000000e+00> : vector<2x286xf32>
    %49 = tpu.matmul %47, %48, %cst_42 {dimension_numbers = #tpu.dot_dimension_numbers<[1], [0], [0], [1], [0, 0, 1, 1], [], []>} : vector<2x2xbf16>, vector<2x286xbf16>, vector<2x286xf32> -> vector<2x286xf32>
    %50 = arith.addf %46, %49 : vector<2x286xf32>
    %51 = vector.extract_strided_slice %45 {offsets = [0, 2], sizes = [2, 2], strides = [1, 1]} : vector<2x18xbf16> to vector<2x2xbf16>
    %52 = vector.extract_strided_slice %44 {offsets = [0, 1], sizes = [2, 286], strides = [1, 1]} : vector<2x324xbf16> to vector<2x286xbf16>
    %cst_43 = arith.constant dense<0.000000e+00> : vector<2x286xf32>
    %53 = tpu.matmul %51, %52, %cst_43 {dimension_numbers = #tpu.dot_dimension_numbers<[1], [0], [0], [1], [0, 0, 1, 1], [], []>} : vector<2x2xbf16>, vector<2x286xbf16>, vector<2x286xf32> -> vector<2x286xf32>
    %54 = arith.addf %50, %53 : vector<2x286xf32>
    %55 = vector.extract_strided_slice %45 {offsets = [0, 4], sizes = [2, 2], strides = [1, 1]} : vector<2x18xbf16> to vector<2x2xbf16>
    %56 = vector.extract_strided_slice %44 {offsets = [0, 2], sizes = [2, 286], strides = [1, 1]} : vector<2x324xbf16> to vector<2x286xbf16>
    %cst_44 = arith.constant dense<0.000000e+00> : vector<2x286xf32>
    %57 = tpu.matmul %55, %56, %cst_44 {dimension_numbers = #tpu.dot_dimension_numbers<[1], [0], [0], [1], [0, 0, 1, 1], [], []>} : vector<2x2xbf16>, vector<2x286xbf16>, vector<2x286xf32> -> vector<2x286xf32>
    %58 = arith.addf %54, %57 : vector<2x286xf32>
    %59 = vector.extract_strided_slice %45 {offsets = [0, 6], sizes = [2, 2], strides = [1, 1]} : vector<2x18xbf16> to vector<2x2xbf16>
    %60 = vector.extract_strided_slice %44 {offsets = [0, 18], sizes = [2, 286], strides = [1, 1]} : vector<2x324xbf16> to vector<2x286xbf16>
    %cst_45 = arith.constant dense<0.000000e+00> : vector<2x286xf32>
    %61 = tpu.matmul %59, %60, %cst_45 {dimension_numbers = #tpu.dot_dimension_numbers<[1], [0], [0], [1], [0, 0, 1, 1], [], []>} : vector<2x2xbf16>, vector<2x286xbf16>, vector<2x286xf32> -> vector<2x286xf32>
    %62 = arith.addf %58, %61 : vector<2x286xf32>
    %63 = vector.extract_strided_slice %45 {offsets = [0, 8], sizes = [2, 2], strides = [1, 1]} : vector<2x18xbf16> to vector<2x2xbf16>
    %64 = vector.extract_strided_slice %44 {offsets = [0, 19], sizes = [2, 286], strides = [1, 1]} : vector<2x324xbf16> to vector<2x286xbf16>
    %cst_46 = arith.constant dense<0.000000e+00> : vector<2x286xf32>
    %65 = tpu.matmul %63, %64, %cst_46 {dimension_numbers = #tpu.dot_dimension_numbers<[1], [0], [0], [1], [0, 0, 1, 1], [], []>} : vector<2x2xbf16>, vector<2x286xbf16>, vector<2x286xf32> -> vector<2x286xf32>
    %66 = arith.addf %62, %65 : vector<2x286xf32>
    %67 = vector.extract_strided_slice %45 {offsets = [0, 10], sizes = [2, 2], strides = [1, 1]} : vector<2x18xbf16> to vector<2x2xbf16>
    %68 = vector.extract_strided_slice %44 {offsets = [0, 20], sizes = [2, 286], strides = [1, 1]} : vector<2x324xbf16> to vector<2x286xbf16>
    %cst_47 = arith.constant dense<0.000000e+00> : vector<2x286xf32>
    %69 = tpu.matmul %67, %68, %cst_47 {dimension_numbers = #tpu.dot_dimension_numbers<[1], [0], [0], [1], [0, 0, 1, 1], [], []>} : vector<2x2xbf16>, vector<2x286xbf16>, vector<2x286xf32> -> vector<2x286xf32>
    %70 = arith.addf %66, %69 : vector<2x286xf32>
    %71 = vector.extract_strided_slice %45 {offsets = [0, 12], sizes = [2, 2], strides = [1, 1]} : vector<2x18xbf16> to vector<2x2xbf16>
    %72 = vector.extract_strided_slice %44 {offsets = [0, 36], sizes = [2, 286], strides = [1, 1]} : vector<2x324xbf16> to vector<2x286xbf16>
    %cst_48 = arith.constant dense<0.000000e+00> : vector<2x286xf32>
    %73 = tpu.matmul %71, %72, %cst_48 {dimension_numbers = #tpu.dot_dimension_numbers<[1], [0], [0], [1], [0, 0, 1, 1], [], []>} : vector<2x2xbf16>, vector<2x286xbf16>, vector<2x286xf32> -> vector<2x286xf32>
    %74 = arith.addf %70, %73 : vector<2x286xf32>
    %75 = vector.extract_strided_slice %45 {offsets = [0, 14], sizes = [2, 2], strides = [1, 1]} : vector<2x18xbf16> to vector<2x2xbf16>
    %76 = vector.extract_strided_slice %44 {offsets = [0, 37], sizes = [2, 286], strides = [1, 1]} : vector<2x324xbf16> to vector<2x286xbf16>
    %cst_49 = arith.constant dense<0.000000e+00> : vector<2x286xf32>
    %77 = tpu.matmul %75, %76, %cst_49 {dimension_numbers = #tpu.dot_dimension_numbers<[1], [0], [0], [1], [0, 0, 1, 1], [], []>} : vector<2x2xbf16>, vector<2x286xbf16>, vector<2x286xf32> -> vector<2x286xf32>
    %78 = arith.addf %74, %77 : vector<2x286xf32>
    %79 = vector.extract_strided_slice %45 {offsets = [0, 16], sizes = [2, 2], strides = [1, 1]} : vector<2x18xbf16> to vector<2x2xbf16>
    %80 = vector.extract_strided_slice %44 {offsets = [0, 38], sizes = [2, 286], strides = [1, 1]} : vector<2x324xbf16> to vector<2x286xbf16>
    %cst_50 = arith.constant dense<0.000000e+00> : vector<2x286xf32>
    %81 = tpu.matmul %79, %80, %cst_50 {dimension_numbers = #tpu.dot_dimension_numbers<[1], [0], [0], [1], [0, 0, 1, 1], [], []>} : vector<2x2xbf16>, vector<2x286xbf16>, vector<2x286xf32> -> vector<2x286xf32>
    %82 = arith.addf %78, %81 : vector<2x286xf32>
    %c0_51 = arith.constant 0 : index
    %c0_52 = arith.constant 0 : index
    %83 = vector.load %arg7[%c0_51, %c0_52] : memref<2x1xf32, #tpu.memory_space<vmem>>, vector<2x1xf32>
    %84 = vector.broadcast %83 : vector<2x1xf32> to vector<2x286xf32>
    %85 = arith.addf %82, %84 : vector<2x286xf32>
    %cst_53 = arith.constant 0.000000e+00 : f32
    %86 = vector.broadcast %cst_53 : f32 to vector<2x286xf32>
    %87 = arith.maximumf %85, %86 : vector<2x286xf32>
    %88 = arith.truncf %87 : vector<2x286xf32> to vector<2x286xbf16>
    %c0_54 = arith.constant 0 : index
    %c0_55 = arith.constant 0 : index
    %89 = vector.load %arg8[%c0_54, %c0_55] : memref<8x2xbf16, #tpu.memory_space<vmem>>, vector<8x2xbf16>
    %cst_56 = arith.constant dense<0.000000e+00> : vector<8x286xf32>
    %90 = tpu.matmul %89, %88, %cst_56 {dimension_numbers = #tpu.dot_dimension_numbers<[1], [0], [0], [1], [0, 0, 1, 1], [], []>} : vector<8x2xbf16>, vector<2x286xbf16>, vector<8x286xf32> -> vector<8x286xf32>
    %c0_57 = arith.constant 0 : index
    %c0_58 = arith.constant 0 : index
    %91 = vector.load %arg9[%c0_57, %c0_58] : memref<8x1xf32, #tpu.memory_space<vmem>>, vector<8x1xf32>
    %92 = vector.broadcast %91 : vector<8x1xf32> to vector<8x286xf32>
    %93 = arith.addf %90, %92 : vector<8x286xf32>
    %cst_59 = arith.constant 0.000000e+00 : f32
    %94 = vector.broadcast %cst_59 : f32 to vector<8x286xf32>
    %95 = arith.maximumf %93, %94 : vector<8x286xf32>
    %c0_60 = arith.constant 0 : index
    %c0_61 = arith.constant 0 : index
    %96 = vector.load %arg2[%c0_60, %c0_61] : memref<8x4xbf16, #tpu.memory_space<vmem>>, vector<8x4xbf16>
    %c0_62 = arith.constant 0 : index
    %c0_63 = arith.constant 0 : index
    %c0_64 = arith.constant 0 : index
    %97 = vector.load %arg1[%c0_62, %c0_63, %c0_64] : memref<1x4x256xbf16, #tpu.memory_space<vmem>>, vector<1x4x256xbf16>
    %98 = vector.shape_cast %97 : vector<1x4x256xbf16> to vector<4x256xbf16>
    %cst_65 = arith.constant dense<0.000000e+00> : vector<8x256xf32>
    %99 = tpu.matmul %96, %98, %cst_65 {dimension_numbers = #tpu.dot_dimension_numbers<[1], [0], [0], [1], [0, 0, 1, 1], [], []>} : vector<8x4xbf16>, vector<4x256xbf16>, vector<8x256xf32> -> vector<8x256xf32>
    %c0_66 = arith.constant 0 : index
    %c0_67 = arith.constant 0 : index
    %100 = vector.load %arg3[%c0_66, %c0_67] : memref<8x1xf32, #tpu.memory_space<vmem>>, vector<8x1xf32>
    %101 = vector.broadcast %100 : vector<8x1xf32> to vector<8x256xf32>
    %102 = arith.addf %99, %101 : vector<8x256xf32>
    %cst_68 = arith.constant 0.000000e+00 : f32
    %103 = vector.broadcast %cst_68 : f32 to vector<8x256xf32>
    %104 = arith.maximumf %102, %103 : vector<8x256xf32>
    %105 = vector.extract_strided_slice %95 {offsets = [0, 0], sizes = [8, 16], strides = [1, 1]} : vector<8x286xf32> to vector<8x16xf32>
    %106 = vector.extract_strided_slice %95 {offsets = [0, 18], sizes = [8, 16], strides = [1, 1]} : vector<8x286xf32> to vector<8x16xf32>
    %107 = vector.extract_strided_slice %95 {offsets = [0, 36], sizes = [8, 16], strides = [1, 1]} : vector<8x286xf32> to vector<8x16xf32>
    %108 = vector.extract_strided_slice %95 {offsets = [0, 54], sizes = [8, 16], strides = [1, 1]} : vector<8x286xf32> to vector<8x16xf32>
    %109 = vector.extract_strided_slice %95 {offsets = [0, 72], sizes = [8, 16], strides = [1, 1]} : vector<8x286xf32> to vector<8x16xf32>
    %110 = vector.extract_strided_slice %95 {offsets = [0, 90], sizes = [8, 16], strides = [1, 1]} : vector<8x286xf32> to vector<8x16xf32>
    %111 = vector.extract_strided_slice %95 {offsets = [0, 108], sizes = [8, 16], strides = [1, 1]} : vector<8x286xf32> to vector<8x16xf32>
    %112 = vector.extract_strided_slice %95 {offsets = [0, 126], sizes = [8, 16], strides = [1, 1]} : vector<8x286xf32> to vector<8x16xf32>
    %113 = vector.extract_strided_slice %95 {offsets = [0, 144], sizes = [8, 16], strides = [1, 1]} : vector<8x286xf32> to vector<8x16xf32>
    %114 = vector.extract_strided_slice %95 {offsets = [0, 162], sizes = [8, 16], strides = [1, 1]} : vector<8x286xf32> to vector<8x16xf32>
    %115 = vector.extract_strided_slice %95 {offsets = [0, 180], sizes = [8, 16], strides = [1, 1]} : vector<8x286xf32> to vector<8x16xf32>
    %116 = vector.extract_strided_slice %95 {offsets = [0, 198], sizes = [8, 16], strides = [1, 1]} : vector<8x286xf32> to vector<8x16xf32>
    %117 = vector.extract_strided_slice %95 {offsets = [0, 216], sizes = [8, 16], strides = [1, 1]} : vector<8x286xf32> to vector<8x16xf32>
    %118 = vector.extract_strided_slice %95 {offsets = [0, 234], sizes = [8, 16], strides = [1, 1]} : vector<8x286xf32> to vector<8x16xf32>
    %119 = vector.extract_strided_slice %95 {offsets = [0, 252], sizes = [8, 16], strides = [1, 1]} : vector<8x286xf32> to vector<8x16xf32>
    %120 = vector.extract_strided_slice %95 {offsets = [0, 270], sizes = [8, 16], strides = [1, 1]} : vector<8x286xf32> to vector<8x16xf32>
    %121 = tpu.concatenate %105, %106, %107, %108, %109, %110, %111, %112, %113, %114, %115, %116, %117, %118, %119, %120 in 1 : vector<8x16xf32>, vector<8x16xf32>, vector<8x16xf32>, vector<8x16xf32>, vector<8x16xf32>, vector<8x16xf32>, vector<8x16xf32>, vector<8x16xf32>, vector<8x16xf32>, vector<8x16xf32>, vector<8x16xf32>, vector<8x16xf32>, vector<8x16xf32>, vector<8x16xf32>, vector<8x16xf32>, vector<8x16xf32> -> vector<8x256xf32>
    %122 = arith.addf %121, %104 : vector<8x256xf32>
    %c0_69 = arith.constant 0 : index
    %c0_70 = arith.constant 0 : index
    %c0_71 = arith.constant 0 : index
    %123 = vector.load %arg10[%c0_69, %c0_70, %c0_71] : memref<1x8x256xf32, #tpu.memory_space<vmem>>, vector<1x8x256xf32>
    %124 = vector.shape_cast %123 : vector<1x8x256xf32> to vector<8x256xf32>
    %125 = vector.shape_cast %122 : vector<8x256xf32> to vector<1x8x256xf32>
    tpu.vector_store %arg10[%c0_69, %c0_70, %c0_71], %125 {strides = array<i32>} : memref<1x8x256xf32, #tpu.memory_space<vmem>>, vector<1x8x256xf32>,
    return
  }
  func.func @transform_0(%arg0: i32) -> (i32, i32, i32) {
    %c0_i32 = arith.constant 0 : i32
    %c0_i32_0 = arith.constant 0 : i32
    %c0_i32_1 = arith.constant 0 : i32
    return %arg0, %c0_i32, %c0_i32_0 : i32, i32, i32
  }
  func.func @transform_1(%arg0: i32) -> (i32, i32) {
    %c0_i32 = arith.constant 0 : i32
    %c0_i32_0 = arith.constant 0 : i32
    %c0_i32_1 = arith.constant 0 : i32
    return %c0_i32, %c0_i32_0 : i32, i32
  }
  func.func @transform_2(%arg0: i32) -> (i32, i32) {
    %c0_i32 = arith.constant 0 : i32
    %c0_i32_0 = arith.constant 0 : i32
    %c0_i32_1 = arith.constant 0 : i32
    return %c0_i32, %c0_i32_0 : i32, i32
  }
  func.func @transform_3(%arg0: i32) -> (i32, i32) {
    %c0_i32 = arith.constant 0 : i32
    %c0_i32_0 = arith.constant 0 : i32
    %c0_i32_1 = arith.constant 0 : i32
    return %c0_i32, %c0_i32_0 : i32, i32
  }
  func.func @transform_4(%arg0: i32) -> (i32, i32) {
    %c0_i32 = arith.constant 0 : i32
    %c0_i32_0 = arith.constant 0 : i32
    %c0_i32_1 = arith.constant 0 : i32
    return %c0_i32, %c0_i32_0 : i32, i32
  }
  func.func @transform_5(%arg0: i32) -> (i32, i32) {
    %c0_i32 = arith.constant 0 : i32
    %c0_i32_0 = arith.constant 0 : i32
    %c0_i32_1 = arith.constant 0 : i32
    return %c0_i32, %c0_i32_0 : i32, i32
  }
  func.func @transform_6(%arg0: i32) -> (i32, i32) {
    %c0_i32 = arith.constant 0 : i32
    %c0_i32_0 = arith.constant 0 : i32
    %c0_i32_1 = arith.constant 0 : i32
    return %c0_i32, %c0_i32_0 : i32, i32
  }
  func.func @transform_7(%arg0: i32) -> (i32, i32) {
    %c0_i32 = arith.constant 0 : i32
    %c0_i32_0 = arith.constant 0 : i32
    %c0_i32_1 = arith.constant 0 : i32
    return %c0_i32, %c0_i32_0 : i32, i32
  }
  func.func @transform_8(%arg0: i32) -> (i32, i32) {
    %c0_i32 = arith.constant 0 : i32
    %c0_i32_0 = arith.constant 0 : i32
    %c0_i32_1 = arith.constant 0 : i32
    return %c0_i32, %c0_i32_0 : i32, i32
  }
  func.func @transform_9(%arg0: i32) -> (i32, i32, i32) {
    %c0_i32 = arith.constant 0 : i32
    %c0_i32_0 = arith.constant 0 : i32
    %c0_i32_1 = arith.constant 0 : i32
    return %arg0, %c0_i32, %c0_i32_0 : i32, i32, i32
  }
}

</mosaic_0001>

<bundles_post_ra>
// kernel: tpu_custom_call.1
= control target key start
LH: loop header
LB: loop body
LE: loop exit
PB: predicated region body
PF: predicated region fallthrough
CT: control target
= control target key end

     0   :  { %14 = vsyncpa [#allocation3], 0  ;;  %s2583_s0 = inlined_call_operand.vmem [shape: bf16[2,4,256], index: 0, kind: input, shape index: {}]   ;;  %s2584_s1 = inlined_call_operand.vmem [shape: bf16[8,4], index: 1, kind: input, shape index: {}]   ;;  %s2585_s2 = inlined_call_operand.vmem [shape: f32[8,1], index: 2, kind: input, shape index: {}]   ;;  %s2586_s3 = inlined_call_operand.vmem [shape: bf16[2,4], index: 3, kind: input, shape index: {}]   ;;  %s2587_s4 = inlined_call_operand.vmem [shape: f32[2,1], index: 4, kind: input, shape index: {}]   ;;  %s2588_s5 = inlined_call_operand.vmem [shape: bf16[2,18], index: 5, kind: input, shape index: {}]   ;;  %s2589_s6 = inlined_call_operand.vmem [shape: f32[2,1], index: 6, kind: input, shape index: {}]   ;;  %s2590_s7 = inlined_call_operand.vmem [shape: bf16[8,2], index: 7, kind: input, shape index: {}]   ;;  %s2591_s8 = inlined_call_operand.vmem [shape: f32[8,1], index: 8, kind: input, shape index: {}]   ;;  %s2592_s9 = inlined_call_operand.hbm [shape: f32[2,8,256], index: 9, kind: output, shape index: {}]  }
   0x1   :  { %16 = vsyncpa [#allocation3 + $0x1], 0  ;;  %s2256_s30 = smov 0   ;;  %s2258_s10 = smov 0  }
   0x2   :  { %s2260_s11 = smov 0   ;;  %s2262_s12 = smov 0  }
   0x3 LB: > { %s2277_s13 = sadd.s32 4294967295, %s2163_s12   ;;  %s1882_s14 = sadd.s32 4294967294, %s2163_s12   ;;  %s2163_s12 = sphi %s2262_s12, %s2609_s12   ;;  %s2159_s11 = sphi %s2260_s11, %s2608_s11   ;;  %s2155_s10 = sphi %s2258_s10, %s2607_s10   ;;  %s2151_s30 = sphi %s2256_s30, %s2606_s30  }
   0x4   : > { %s2281_s15 = sadd.s32 1, %s2163_s12   ;;  %s223_s16 = sadd.s32 1, %s2159_s11 }
   0x5   : > { %s220_s17 = ssub.s32 %s2163_s12, %s2281_s15  ;;  %p233_p0 = scmp.ne.s32.totalorder %s2159_s11, %s2155_s10 }
   0x6   : > { %p221_p1 = scmp.eq.s32.totalorder %s220_s17, 0  ;;  %p234_p2 = scmp.eq.s32.totalorder %s2277_s13, 1 }
   0x7   : > { %p239_p3 = scmp.ne.s32.totalorder %s2155_s10, %s2151_s30  ;;  %p240_p4 = scmp.eq.s32.totalorder %s1882_s14, 1 }
   0x8   : > { %s2292_s18 = scalar_select %p221_p1, %s2159_s11, %s223_s16  }
   0x9   : > { %p2294_p5 = por %p234_p2, %p233_p0  ;;  %p2298_p6 = por %p240_p4, %p239_p3 }
   0xa   : > { %p1885_p7 = scmp.ge.s32.totalorder %s2163_s12, 1  ;;  %p290_p8 = scmp.lt.s32.totalorder %s2163_s12, 3 }
   0xc   : > { %p291_p9 = pnand %p1885_p7, %p290_p8 }
   0xd   : > { %p326_p10 = scmp.lt.s32.totalorder (!%p291_p9), %s2277_s13, 1  ;;  %s2165_s26 = smov (!%p291_p9), 2  }
   0xe   : > { %294 = sbr.rel (%p291_p9) target bundleno = 1226 (0x4ca), region = 56  ;;  %s2166_s27 = smov (!%p291_p9), 6  }
   0xf   : > { %s2167_s28 = smov (!%p291_p9), 4   ;;  %s2168_s29 = smov (!%p291_p9), 8  }
  0x10   : > { %s2169_s14 = smov (!%p291_p9), 10   ;;  %s2170_s16 = smov (!%p291_p9), 12  }
  0x11   : > { %s2171_s17 = smov (!%p291_p9), 14   ;;  %s2174_s23 = smov (!%p291_p9), 19  }
  0x12   : > { %s2175_s24 = smov (!%p291_p9), 25  }
  0x13   : > { %s327_s21 = scalar_select %p326_p10, %s2277_s13, 1  ;;  %vm421_vm0 = vcmask 15360   ;;  %vm424_vm1 = vcmask 146432   ;;  %vm426_vm2 = vcmask 162816   ;;  %vm429_vm3 = vcmask 293888  }
  0x14   : > { %vm431_vm4 = vcmask 310272   ;;  %vm434_vm5 = vcmask 441344   ;;  %vm436_vm6 = vcmask 457728   ;;  %v2181_v10 = vmov 0.0   ;;  %v470_v26 = vld [vmem:[%s2587_s4] sm:$0x3] }
  0x15   : > { %s1932_s22 = sshll.u32 %s327_s21, 2  ;;  %s2172_s21 = smov 16   ;;  %1956 = vmatprep.subr.bf16.mxu1 %v2181_v10  ;;  %vm439_vm7 = vcmask 588800   ;;  %vm441_vm8 = vcmask 605184   ;;  %v2182_v15 = vmov 0   ;;  %vm2593_vm9 = vcmask 736256  }
  0x16   : > { %s2309_s25 = scalar_lea.vmem %s2583_s0, %s1932_s22  ;;  %s2173_s22 = smov 21   ;;  %519 = vmatprep.mubr.bf16.mxu0 %v2182_v15  ;;  %2101 = vset.pattern.permute.xlu0 %v2182_v15  ;;  %vm2183_vm10 = vmmov 0   ;;  %vm446_vm11 = vcmask 752640   ;;  %vm449_vm12 = vcmask 883712   ;;  %vm451_vm13 = vcmask 900096  }
  0x17   : > { %v1890_v0 = vld.sshfl [vmem:[%s2309_s25 + $0x2] sm:$0x3 pattern:$0x76325410]  ;;  %1958 = vmatprep.mubr.msk.bf16.mxu1 %vm2183_vm10, %v2181_v10  ;;  %2102 = vset.pattern.permute.xlu1 %v2182_v15  ;;  %vm454_vm14 = vcmask 1031168   ;;  %vm358_vm15 = vcmask 154624   ;;  %v579_v60 = vlaneseq }
  0x18   : > { %405 = vrot.lane.b32.xlu0 %v1890_v0, %s2165_s26  ;;  %409 = vrot.lane.b32.xlu1 %v1890_v0, %s2166_s27  ;;  %v1889_v1 = vld.sshfl [vmem:[%s2309_s25] sm:$0x3 pattern:$0x76325410]  ;;  %s2176_s26 = smov 23   ;;  %s2177_s27 = smov 29  }
  0x19   : > { %v469_v57 = vld [vmem:[%s2586_s3] sm:$0x1]  ;;  %v2184_v58 = vmov 1966171168   ;;  %v580_v63 = vshrl.u32 %v579_v60, 7 }
  0x1a   : > { %v577_v59 = vunpack.c.l.s4 %v2184_v58 }
  0x1c   : > { %407 = vrot.lane.b32.xlu0 %v1890_v0, %s2167_s28  ;;  %411 = vrot.lane.b32.xlu1 %v1890_v0, %s2168_s29  ;;  %s2178_s28 = smov 27   ;;  %s2179_s29 = smov 33   ;;  %v578_v62 = vunpack.c.0.s8 %v577_v59 }
  0x20   : > { %413 = vrot.lane.b32.xlu0 %v1890_v0, %s2169_s14  ;;  %415 = vrot.lane.b32.xlu1 %v1890_v0, %s2170_s16  ;;  %s2180_s14 = smov 31   ;;  %s2190_s16 = smov 122  }
  0x24   : > { %417 = vrot.lane.b32.xlu0 %v1890_v0, %s2171_s17  ;;  %419 = vrot.lane.b32.xlu1 %v1890_v0, %s2172_s21  ;;  %s2594_s17 = smov 108   ;;  %s2192_s21 = smov 120  }
  0x28   : > { %344 = vrot.lane.b32.xlu1 %v1889_v1, %s2173_s22  ;;  %342 = vrot.lane.b32.xlu0 %v1889_v1, %s2174_s23  ;;  %s2193_s22 = smov 92   ;;  %s2595_s23 = smov 118  }
  0x2c   : > { %348 = vrot.lane.b32.xlu1 %v1889_v1, %s2175_s24  ;;  %346 = vrot.lane.b32.xlu0 %v1889_v1, %s2176_s26  ;;  %s2185_s26 = smov 127   ;;  %s2195_s24 = smov 91  }
  0x30   : > { %352 = vrot.lane.b32.xlu1 %v1889_v1, %s2177_s27  ;;  %350 = vrot.lane.b32.xlu0 %v1889_v1, %s2178_s28  ;;  %s2186_s27 = smov 126   ;;  %s2597_s28 = smov 110  }
  0x34   : > { %356 = vrot.lane.b32.xlu1 %v1889_v1, %s2179_s29  ;;  %354 = vrot.lane.b32.xlu0 %v1889_v1, %s2180_s14  ;;  %s2189_s14 = smov 109  }
  0x8a   : > { %v406_v2 = vpop.permute.xlu0 %405  ;;  %v410_v3 = vpop.permute.xlu1 %409 }
  0x8b   : > { %v423_v4 = vsel %vm421_vm0, 0, %v406_v2 }
  0x8c   : > { %v425_v5 = vsel %vm424_vm1, %v423_v4, 0  ;;  %vm362_vm1 = vcmask 285696  }
  0x8e   : > { %v408_v6 = vpop.permute.xlu0 %407  ;;  %v412_v7 = vpop.permute.xlu1 %411 }
  0x8f   : > { %v428_v8 = vsel %vm426_vm2, %v425_v5, %v408_v6  ;;  %vm364_vm2 = vcmask 302080  }
  0x90   : > { %v430_v9 = vsel %vm429_vm3, %v428_v8, 0  ;;  %vm367_vm3 = vcmask 433152   ;;  %v581_v8 = vsub.s32 %v578_v62, %v580_v63 }
  0x91   : > { %v433_v11 = vsel %vm431_vm4, %v430_v9, %v410_v3  ;;  %vm369_vm4 = vcmask 449536  }
  0x92   : > { %v435_v12 = vsel %vm434_vm5, %v433_v11, 0  ;;  %v414_v13 = vpop.permute.xlu0 %413  ;;  %v416_v14 = vpop.permute.xlu1 %415  ;;  %vm372_vm5 = vcmask 580608  }
  0x93   : > { %v438_v16 = vsel %vm436_vm6, %v435_v12, %v412_v7  ;;  %vm374_vm6 = vcmask 596992   ;;  %v2349_v12 = vld [vmem:[%s2588_s5] sm:$0x1] }
  0x94   : > { %v440_v17 = vsel %vm439_vm7, %v438_v16, 0  ;;  %vm377_vm7 = vcmask 728064  }
  0x95   : > { %v443_v18 = vsel %vm441_vm8, %v440_v17, %v414_v13  ;;  %vm379_vm8 = vcmask 744448  }
  0x96   : > { %v445_v19 = vsel %vm2593_vm9, %v443_v18, 0  ;;  %v418_v20 = vpop.permute.xlu0 %417  ;;  %v420_v21 = vpop.permute.xlu1 %419  ;;  %vm466_vm9 = vcmask 400384  }
  0x97   : > { %v448_v22 = vsel %vm446_vm11, %v445_v19, %v416_v14  ;;  %459 = vrot.lane.b32.xlu1 %v420_v21, %s2179_s29 }
  0x98   : > { %v450_v23 = vsel %vm449_vm12, %v448_v22, 0 }
  0x99   : > { %v453_v24 = vsel %vm451_vm13, %v450_v23, %v418_v20  ;;  %v582_v20 = vrot.slane %v2349_v12, %v581_v8  ;;  %v1540_v23 = vld [vmem:[%s2589_s6] sm:$0x3] }
  0x9a   : > { %v455_v25 = vsel %vm454_vm14, %v453_v24, 0  ;;  %v343_v27 = vpop.permute.xlu0 %342  ;;  %v345_v30 = vpop.permute.xlu1 %344  ;;  %v1660_v24 = vld [vmem:[%s2585_s2] sm:$0xff] }
  0x9b   : > { %457 = vrot.lane.b32.xlu0 %v455_v25, %s2179_s29  ;;  %v361_v28 = vsel %vm358_vm15, 0, %v343_v27  ;;  %vm382_vm15 = vcmask 875520   ;;  %v589_v22 = vrot.slane %v582_v20, %v581_v8  ;;  %s2188_s29 = smov 124  }
  0x9c   : > { %v363_v29 = vsel %vm362_vm1, %v361_v28, 0  ;;  %vm384_vm1 = vcmask 891904  }
  0x9d   : > { %v366_v31 = vsel %vm364_vm2, %v363_v29, %v345_v30  ;;  %vm387_vm2 = vcmask 1022976  }
  0x9e   : > { %v368_v32 = vsel %vm367_vm3, %v366_v31, 0  ;;  %v347_v33 = vpop.permute.xlu0 %346  ;;  %v349_v36 = vpop.permute.xlu1 %348  ;;  %vm392_vm3 = vcmask 121856  }
  0x9f   : > { %473 = vperm.xlu0 %2101, %v470_v26   ;;  %v371_v34 = vsel %vm369_vm4, %v368_v32, %v347_v33  ;;  %vm389_vm4 = vcmask 1039360  }
  0xa0   : > { %v373_v35 = vsel %vm372_vm5, %v371_v34, 0  ;;  %vm394_vm5 = vcmask 138240  }
  0xa1   : > { %v376_v37 = vsel %vm374_vm6, %v373_v35, %v349_v36  ;;  %vm461_vm6 = vcmask 269312  }
  0xa2   : > { %v378_v38 = vsel %vm377_vm7, %v376_v37, 0  ;;  %v351_v39 = vpop.permute.xlu0 %350  ;;  %v353_v40 = vpop.permute.xlu1 %352  ;;  %vm480_vm7 = vcmask 1041408  }
  0xa3   : > { %v381_v41 = vsel %vm379_vm8, %v378_v38, %v351_v39 }
  0xa4   : > { %v383_v42 = vsel %vm382_vm15, %v381_v41, 0  ;;  %vm476_vm15 = vcmask 31744  }
  0xa5   : > { %v386_v44 = vsel %vm384_vm1, %v383_v42, %v353_v40 }
  0xa6   : > { %v357_v43 = vpop.permute.xlu1 %356  ;;  %v355_v45 = vpop.permute.xlu0 %354  ;;  %v388_v46 = vsel %vm387_vm2, %v386_v44, 0  ;;  %vm1793_vm2 = vcmask 785408  }
  0xa7   : > { %v393_v47 = vsel %vm392_vm3, %v355_v45, 0  ;;  %v391_v49 = vsel %vm389_vm4, %v388_v46, %v355_v45  ;;  %vm1751_vm3 = vcmask 932864  }
  0xa8   : > { %v396_v51 = vsel %vm394_vm5, %v393_v47, %v357_v43  ;;  %v481_v54 = vsel %vm480_vm7, %v391_v49, 0 }
 0x109   : > { %v460_v48 = vpop.permute.xlu1 %459 }
 0x10d   : > { %v458_v50 = vpop.permute.xlu0 %457 }
 0x10e   : > { %v462_v52 = vsel %vm461_vm6, %v458_v50, %v460_v48  ;;  %v465_v53 = vsel %vm461_vm6, %v396_v51, %v458_v50 }
 0x10f   : > { %1891 = vmatprep.subr.msk.bf16.mxu0 %vm480_vm7, %v465_v53  ;;  %v468_v55 = vsel %vm466_vm9, %v462_v52, 0  ;;  %vm607_vm9 = vcmask 1040384  }
 0x110   : > { %502 = vmatpush1.bf16.msra.mxu0 %v481_v54  ;;  %v485_v56 = vsel %vm480_vm7, %v468_v55, 0 }
 0x111   : > { %1957 = vmatpush3.bf16.msra.mxu1 %v485_v56 }
 0x112   : > { %1962 = vmatprep.subr.bf16.mxu1 %v2181_v10 }
 0x113   : > { %1892 = vmatmul.mubr.msk.bf16.vlgmr.msra.gmra.mxu0 %vm476_vm15, %v469_v57 }
 0x114   : > { %1959 = vmatmul.mubr.msk.bf16.vlgmr.msra.gmra.mxu1 %vm476_vm15, %v469_v57  ;;  %649 = vmatprep.mubr.bf16.mxu0 %v2182_v15 }
 0x115   : > { %1964 = vmatprep.mubr.msk.bf16.mxu1 %vm2183_vm10, %v2181_v10 }
 0x11a   : > { %v474_v61 = vpop.permute.xlu0 %473 }
 0x1d3   : > { %v521_v0 = vpop.f32.mrf.mxu0 }
 0x1d4   : > { %v522_v1 = vadd.f32 %v521_v0, %v474_v61  ;;  %v562_v2 = vpop.f32.mrf.mxu1 }
 0x1d5   : > { %v563_v3 = vadd.f32 %v562_v2, %v474_v61  ;;  %v523_v4 = vpop.f32.mrf.mxu0 }
 0x1d6   : > { %v568_v5 = vmax.f32 %v522_v1, 0.0  ;;  %v524_v6 = vadd.f32 %v523_v4, %v474_v61  ;;  %v1960_v7 = vpop.f32.mrf.mxu1 }
 0x1d7   : > { %v570_v9 = vmax.f32 %v563_v3, 0.0  ;;  %v525_v11 = vpop.f32.mrf.mxu0 }
 0x1d8   : > { %v2351_v13 = vpack.c.bf16 %v568_v5, %v568_v5  ;;  %v569_v14 = vmax.f32 %v524_v6, 0.0  ;;  %v565_v16 = vpop.f32.mrf.mxu1 }
 0x1d9   : > { %v2353_v17 = vpack.c.bf16 %v570_v9, %v570_v9  ;;  %v526_v18 = vpop.f32.mrf.mxu0 }
 0x1da   : > { %v1961_v19 = vpop.f32.mrf.mxu1  ;;  %595 = vrot.lane.b32.xlu1 %v2351_v13, %s2185_s26  ;;  %v2358_v21 = vpack.c.bf16 %v569_v14, %v569_v14  ;;  %v702_v36 = vsel %vm607_vm9, %v2351_v13, 0 }
 0x1db   : > { %599 = vrot.lane.b32.xlu0 %v2353_v17, %s2185_s26  ;;  %v708_v35 = vsel %vm607_vm9, %v2353_v17, 0 }
 0x1de   : > { %597 = vrot.lane.b32.xlu1 %v2358_v21, %s2185_s26  ;;  %s2596_s26 = smov 116  }
 0x1df   : > { %793 = vrot.lane.b32.xlu0 %v2351_v13, %s2186_s27 }
 0x1e2   : > { %590 = vrot.lane.b32.xlu1 %v589_v22, %s2186_s27 }
 0x1e3   : > { %797 = vrot.lane.b32.xlu0 %v2353_v17, %s2186_s27 }
 0x1e6   : > { %795 = vrot.lane.b32.xlu1 %v2358_v21, %s2186_s27 }
 0x1e7   : > { %900 = vrot.lane.b32.xlu0 %v2351_v13, %s2597_s28 }
 0x1ea   : > { %791 = vrot.lane.b32.xlu1 %v589_v22, %s2188_s29 }
 0x1eb   : > { %904 = vrot.lane.b32.xlu0 %v2353_v17, %s2597_s28 }
 0x1ee   : > { %902 = vrot.lane.b32.xlu1 %v2358_v21, %s2597_s28  ;;  %s2200_s28 = smov 100  }
 0x1ef   : > { %1007 = vrot.lane.b32.xlu0 %v2351_v13, %s2189_s14 }
 0x1f2   : > { %898 = vrot.lane.b32.xlu1 %v589_v22, %s2190_s16 }
 0x1f3   : > { %1011 = vrot.lane.b32.xlu0 %v2353_v17, %s2189_s14 }
 0x1f6   : > { %1009 = vrot.lane.b32.xlu1 %v2358_v21, %s2189_s14  ;;  %s2197_s14 = smov 90  }
 0x1f7   : > { %1114 = vrot.lane.b32.xlu0 %v2351_v13, %s2594_s17 }
 0x1fa   : > { %1005 = vrot.lane.b32.xlu1 %v589_v22, %s2192_s21 }
 0x1fb   : > { %1118 = vrot.lane.b32.xlu0 %v2353_v17, %s2594_s17 }
 0x1fe   : > { %1116 = vrot.lane.b32.xlu1 %v2358_v21, %s2594_s17  ;;  %s2198_s17 = smov 114  }
 0x1ff   : > { %1221 = vrot.lane.b32.xlu0 %v2351_v13, %s2193_s22 }
 0x202   : > { %1112 = vrot.lane.b32.xlu1 %v589_v22, %s2595_s23  ;;  %s2602_s23 = smov 110  }
 0x203   : > { %1225 = vrot.lane.b32.xlu0 %v2353_v17, %s2193_s22 }
 0x206   : > { %1223 = vrot.lane.b32.xlu1 %v2358_v21, %s2193_s22  ;;  %s1933_s22 = sshll.u32 %s2277_s13, 8 }
 0x207   : > { %1328 = vrot.lane.b32.xlu0 %v2351_v13, %s2195_s24 }
 0x20a   : > { %1219 = vrot.lane.b32.xlu1 %v589_v22, %s2596_s26  ;;  %s2603_s26 = smov 118  }
 0x20b   : > { %1332 = vrot.lane.b32.xlu0 %v2353_v17, %s2195_s24 }
 0x20e   : > { %1330 = vrot.lane.b32.xlu1 %v2358_v21, %s2195_s24  ;;  %s2199_s24 = smov 112  }
 0x20f   : > { %1435 = vrot.lane.b32.xlu0 %v2351_v13, %s2197_s14 }
 0x212   : > { %1326 = vrot.lane.b32.xlu1 %v589_v22, %s2198_s17 }
 0x213   : > { %1439 = vrot.lane.b32.xlu0 %v2353_v17, %s2197_s14 }
 0x216   : > { %1437 = vrot.lane.b32.xlu1 %v2358_v21, %s2197_s14  ;;  %s2605_s14 = smov 116  }
 0x217   : > { %1543 = vperm.xlu0 %2101, %v1540_v23  }
 0x21a   : > { %1433 = vrot.lane.b32.xlu1 %v589_v22, %s2199_s24 }
 0x21b   : > { %1663 = vperm.xlu0 %2101, %v1660_v24  }
 0x24c   : > { %v596_v25 = vpop.permute.xlu1 %595 }
 0x24d   : > { %v600_v26 = vpop.permute.xlu0 %599 }
 0x24e   : > { %v615_v27 = vsel %vm607_vm9, %v600_v26, 0 }
 0x24f   : > { %1963 = vmatpush3.bf16.msra.mxu1 %v615_v27 }
 0x250   : > { %v598_v28 = vpop.permute.xlu1 %597  ;;  %1968 = vmatprep.subr.bf16.mxu1 %v2181_v10 }
 0x251   : > { %v602_v29 = vsel %vm389_vm4, %v596_v25, %v598_v28  ;;  %v603_v30 = vsel %vm389_vm4, %v598_v28, %v600_v26  ;;  %v794_v31 = vpop.permute.xlu0 %793  ;;  %vm1795_vm4 = vcmask 916480  }
 0x252   : > { %v609_v32 = vsel %vm607_vm9, %v602_v29, 0  ;;  %1894 = vmatprep.subr.msk.bf16.mxu0 %vm607_vm9, %v603_v30  ;;  %v1556_v29 = vld [vmem:[%s2591_s8] sm:$0xff] }
 0x253   : > { %632 = vmatpush1.bf16.msra.mxu0 %v609_v32  ;;  %1559 = vperm.xlu1 %2102, %v1556_v29  }
 0x254   : > { %1897 = vmatprep.subr.msk.bf16.mxu0 %vm607_vm9, %v2358_v21  ;;  %v591_v33 = vpop.permute.xlu1 %590 }
 0x255   : > { %v798_v34 = vpop.permute.xlu0 %797  ;;  %1965 = vmatmul.mubr.msk.bf16.vlgmr.msra.gmra.mxu1 %vm421_vm0, %v591_v33 }
 0x256   : > { %1969 = vmatpush3.bf16.msra.mxu1 %v708_v35  ;;  %1895 = vmatmul.mubr.msk.bf16.vlgmr.msra.gmra.mxu0 %vm421_vm0, %v591_v33  ;;  %v812_v42 = vsel %vm607_vm9, %v798_v34, 0 }
 0x257   : > { %725 = vmatpush1.bf16.msra.mxu0 %v702_v36  ;;  %1970 = vmatprep.mubr.msk.bf16.mxu1 %vm2183_vm10, %v2181_v10 }
 0x258   : > { %v796_v37 = vpop.permute.xlu1 %795  ;;  %1974 = vmatprep.subr.bf16.mxu1 %v2181_v10  ;;  %742 = vmatprep.mubr.bf16.mxu0 %v2182_v15 }
 0x259   : > { %v801_v38 = vsel %vm454_vm14, %v796_v37, %v798_v34  ;;  %v901_v39 = vpop.permute.xlu0 %900  ;;  %v800_v40 = vsel %vm454_vm14, %v794_v31, %v796_v37  ;;  %vm1789_vm14 = vcmask 523264  }
 0x25a   : > { %1900 = vmatprep.subr.msk.bf16.mxu0 %vm607_vm9, %v801_v38  ;;  %v806_v44 = vsel %vm607_vm9, %v800_v40, 0 }
 0x25c   : > { %v792_v41 = vpop.permute.xlu1 %791 }
 0x25d   : > { %v905_v43 = vpop.permute.xlu0 %904  ;;  %1971 = vmatmul.mubr.msk.bf16.vlgmr.msra.gmra.mxu1 %vm421_vm0, %v2349_v12 }
 0x25e   : > { %1975 = vmatpush3.bf16.msra.mxu1 %v812_v42  ;;  %1898 = vmatmul.mubr.msk.bf16.vlgmr.msra.gmra.mxu0 %vm421_vm0, %v2349_v12  ;;  %v919_v50 = vsel %vm607_vm9, %v905_v43, 0 }
 0x25f   : > { %829 = vmatpush1.bf16.msra.mxu0 %v806_v44  ;;  %1976 = vmatprep.mubr.msk.bf16.mxu1 %vm2183_vm10, %v2181_v10 }
 0x260   : > { %v903_v45 = vpop.permute.xlu1 %902  ;;  %1980 = vmatprep.subr.bf16.mxu1 %v2181_v10  ;;  %846 = vmatprep.mubr.bf16.mxu0 %v2182_v15 }
 0x261   : > { %v908_v46 = vsel %vm451_vm13, %v903_v45, %v905_v43  ;;  %v1008_v47 = vpop.permute.xlu0 %1007  ;;  %v907_v48 = vsel %vm451_vm13, %v901_v39, %v903_v45  ;;  %vm1787_vm13 = vcmask 392192  }
 0x262   : > { %1903 = vmatprep.subr.msk.bf16.mxu0 %vm607_vm9, %v908_v46  ;;  %v913_v52 = vsel %vm607_vm9, %v907_v48, 0 }
 0x264   : > { %v899_v49 = vpop.permute.xlu1 %898 }
 0x265   : > { %v1012_v51 = vpop.permute.xlu0 %1011  ;;  %1977 = vmatmul.mubr.msk.bf16.vlgmr.msra.gmra.mxu1 %vm421_vm0, %v792_v41 }
 0x266   : > { %1981 = vmatpush3.bf16.msra.mxu1 %v919_v50  ;;  %1901 = vmatmul.mubr.msk.bf16.vlgmr.msra.gmra.mxu0 %vm421_vm0, %v792_v41  ;;  %v1026_v58 = vsel %vm607_vm9, %v1012_v51, 0 }
 0x267   : > { %936 = vmatpush1.bf16.msra.mxu0 %v913_v52  ;;  %1982 = vmatprep.mubr.msk.bf16.mxu1 %vm2183_vm10, %v2181_v10 }
 0x268   : > { %v1010_v53 = vpop.permute.xlu1 %1009  ;;  %1986 = vmatprep.subr.bf16.mxu1 %v2181_v10  ;;  %953 = vmatprep.mubr.bf16.mxu0 %v2182_v15 }
 0x269   : > { %v1015_v54 = vsel %vm384_vm1, %v1010_v53, %v1012_v51  ;;  %v1115_v55 = vpop.permute.xlu0 %1114  ;;  %v1014_v56 = vsel %vm384_vm1, %v1008_v47, %v1010_v53  ;;  %vm1791_vm1 = vcmask 654336  }
 0x26a   : > { %1906 = vmatprep.subr.msk.bf16.mxu0 %vm607_vm9, %v1015_v54  ;;  %v1020_v60 = vsel %vm607_vm9, %v1014_v56, 0 }
 0x26c   : > { %v1006_v57 = vpop.permute.xlu1 %1005 }
 0x26d   : > { %v1119_v59 = vpop.permute.xlu0 %1118  ;;  %1983 = vmatmul.mubr.msk.bf16.vlgmr.msra.gmra.mxu1 %vm421_vm0, %v899_v49 }
 0x26e   : > { %1987 = vmatpush3.bf16.msra.mxu1 %v1026_v58  ;;  %1904 = vmatmul.mubr.msk.bf16.vlgmr.msra.gmra.mxu0 %vm421_vm0, %v899_v49  ;;  %v1133_v2 = vsel %vm607_vm9, %v1119_v59, 0 }
 0x26f   : > { %1043 = vmatpush1.bf16.msra.mxu0 %v1020_v60  ;;  %1988 = vmatprep.mubr.msk.bf16.mxu1 %vm2183_vm10, %v2181_v10 }
 0x270   : > { %v1117_v61 = vpop.permute.xlu1 %1116  ;;  %1992 = vmatprep.subr.bf16.mxu1 %v2181_v10  ;;  %1060 = vmatprep.mubr.bf16.mxu0 %v2182_v15 }
 0x271   : > { %v1122_v62 = vsel %vm449_vm12, %v1117_v61, %v1119_v59  ;;  %v1222_v63 = vpop.permute.xlu0 %1221  ;;  %v1121_v0 = vsel %vm449_vm12, %v1115_v55, %v1117_v61 }
 0x272   : > { %1909 = vmatprep.subr.msk.bf16.mxu0 %vm607_vm9, %v1122_v62  ;;  %v1127_v4 = vsel %vm607_vm9, %v1121_v0, 0 }
 0x274   : > { %v1113_v1 = vpop.permute.xlu1 %1112 }
 0x275   : > { %v1226_v3 = vpop.permute.xlu0 %1225  ;;  %1989 = vmatmul.mubr.msk.bf16.vlgmr.msra.gmra.mxu1 %vm421_vm0, %v1006_v57 }
 0x276   : > { %1993 = vmatpush3.bf16.msra.mxu1 %v1133_v2  ;;  %1907 = vmatmul.mubr.msk.bf16.vlgmr.msra.gmra.mxu0 %vm421_vm0, %v1006_v57  ;;  %v1240_v11 = vsel %vm607_vm9, %v1226_v3, 0 }
 0x277   : > { %1150 = vmatpush1.bf16.msra.mxu0 %v1127_v4  ;;  %1994 = vmatprep.mubr.msk.bf16.mxu1 %vm2183_vm10, %v2181_v10 }
 0x278   : > { %v1224_v5 = vpop.permute.xlu1 %1223  ;;  %1998 = vmatprep.subr.bf16.mxu1 %v2181_v10  ;;  %1167 = vmatprep.mubr.bf16.mxu0 %v2182_v15 }
 0x279   : > { %v1229_v6 = vsel %vm446_vm11, %v1224_v5, %v1226_v3  ;;  %v1329_v7 = vpop.permute.xlu0 %1328  ;;  %v1228_v8 = vsel %vm446_vm11, %v1222_v63, %v1224_v5  ;;  %vm2600_vm11 = vcmask 736256  }
 0x27a   : > { %1912 = vmatprep.subr.msk.bf16.mxu0 %vm607_vm9, %v1229_v6  ;;  %v1234_v13 = vsel %vm607_vm9, %v1228_v8, 0  ;;  %vm2601_vm12 = vmmov %vm2600_vm11 }
 0x27c   : > { %v1220_v9 = vpop.permute.xlu1 %1219 }
 0x27d   : > { %v1333_v12 = vpop.permute.xlu0 %1332  ;;  %1995 = vmatmul.mubr.msk.bf16.vlgmr.msra.gmra.mxu1 %vm421_vm0, %v1113_v1 }
 0x27e   : > { %1999 = vmatpush3.bf16.msra.mxu1 %v1240_v11  ;;  %1910 = vmatmul.mubr.msk.bf16.vlgmr.msra.gmra.mxu0 %vm421_vm0, %v1113_v1  ;;  %v1347_v20 = vsel %vm607_vm9, %v1333_v12, 0 }
 0x27f   : > { %1257 = vmatpush1.bf16.msra.mxu0 %v1234_v13  ;;  %2000 = vmatprep.mubr.msk.bf16.mxu1 %vm2183_vm10, %v2181_v10 }
 0x280   : > { %v1331_v14 = vpop.permute.xlu1 %1330  ;;  %2004 = vmatprep.subr.bf16.mxu1 %v2181_v10  ;;  %1274 = vmatprep.mubr.bf16.mxu0 %v2182_v15 }
 0x281   : > { %v1336_v16 = vsel %vm379_vm8, %v1331_v14, %v1333_v12  ;;  %v1436_v17 = vpop.permute.xlu0 %1435  ;;  %v1335_v18 = vsel %vm379_vm8, %v1329_v7, %v1331_v14  ;;  %vm1777_vm8 = vcmask 818176  }
 0x282   : > { %1915 = vmatprep.subr.msk.bf16.mxu0 %vm607_vm9, %v1336_v16  ;;  %v1341_v21 = vsel %vm607_vm9, %v1335_v18, 0 }
 0x284   : > { %v1327_v19 = vpop.permute.xlu1 %1326 }
 0x285   : > { %2001 = vmatmul.mubr.msk.bf16.vlgmr.msra.gmra.mxu1 %vm421_vm0, %v1220_v9  ;;  %v1440_v22 = vpop.permute.xlu0 %1439 }
 0x286   : > { %2005 = vmatpush3.bf16.msra.mxu1 %v1347_v20  ;;  %1913 = vmatmul.mubr.msk.bf16.vlgmr.msra.gmra.mxu0 %vm421_vm0, %v1220_v9  ;;  %v1454_v26 = vsel %vm607_vm9, %v1440_v22, 0 }
 0x287   : > { %1364 = vmatpush1.bf16.msra.mxu0 %v1341_v21  ;;  %2006 = vmatprep.mubr.msk.bf16.mxu1 %vm2183_vm10, %v2181_v10 }
 0x288   : > { %v1438_v23 = vpop.permute.xlu1 %1437  ;;  %2010 = vmatprep.subr.bf16.mxu1 %v2181_v10  ;;  %1381 = vmatprep.mubr.bf16.mxu0 %v2182_v15 }
 0x289   : > { %v1443_v24 = vsel %vm2600_vm11, %v1438_v23, %v1440_v22  ;;  %v1442_v25 = vsel %vm2601_vm12, %v1436_v17, %v1438_v23 }
 0x28a   : > { %1918 = vmatprep.subr.msk.bf16.mxu0 %vm607_vm9, %v1443_v24  ;;  %v1448_v27 = vsel %vm607_vm9, %v1442_v25, 0 }
 0x28c   : > { %v1434_v28 = vpop.permute.xlu1 %1433 }
 0x28d   : > { %2007 = vmatmul.mubr.msk.bf16.vlgmr.msra.gmra.mxu1 %vm421_vm0, %v1327_v19 }
 0x28e   : > { %2011 = vmatpush3.bf16.msra.mxu1 %v1454_v26  ;;  %1916 = vmatmul.mubr.msk.bf16.vlgmr.msra.gmra.mxu0 %vm421_vm0, %v1327_v19 }
 0x28f   : > { %1471 = vmatpush1.bf16.msra.mxu0 %v1448_v27  ;;  %2012 = vmatprep.mubr.msk.bf16.mxu1 %vm2183_vm10, %v2181_v10 }
 0x290   : > { %1488 = vmatprep.mubr.bf16.mxu0 %v2182_v15  ;;  %2016 = vmatprep.subr.bf16.mxu1 %v2181_v10 }
 0x295   : > { %2013 = vmatmul.mubr.msk.bf16.vlgmr.msra.gmra.mxu1 %vm421_vm0, %v1434_v28 }
 0x296   : > { %1919 = vmatmul.mubr.msk.bf16.vlgmr.msra.gmra.mxu0 %vm421_vm0, %v1434_v28  ;;  %2018 = vmatprep.mubr.msk.bf16.mxu1 %vm2183_vm10, %v2181_v10  ;;  %vm1785_vm10 = vcmask 261120  }
 0x297   : > { %1606 = vmatprep.mubr.bf16.mxu0 %v2182_v15 }
 0x315   : > { %v692_v30 = vpop.f32.mrf.mxu1 }
 0x316   : > { %v651_v31 = vpop.f32.mrf.mxu0 }
 0x317   : > { %v1966_v32 = vpop.f32.mrf.mxu1 }
 0x318   : > { %v653_v33 = vpop.f32.mrf.mxu0 }
 0x319   : > { %v695_v34 = vpop.f32.mrf.mxu1 }
 0x31a   : > { %v655_v35 = vpop.f32.mrf.mxu0 }
 0x31b   : > { %v1967_v36 = vpop.f32.mrf.mxu1 }
 0x31c   : > { %v656_v37 = vpop.f32.mrf.mxu0 }
 0x31d   : > { %v785_v38 = vpop.f32.mrf.mxu1 }
 0x31e   : > { %v744_v39 = vpop.f32.mrf.mxu0  ;;  %v786_v18 = vadd.f32 %v785_v38, %v692_v30 }
 0x31f   : > { %v1972_v40 = vpop.f32.mrf.mxu1  ;;  %v745_v20 = vadd.f32 %v744_v39, %v651_v31 }
 0x320   : > { %v746_v41 = vpop.f32.mrf.mxu0 }
 0x321   : > { %v788_v10 = vpop.f32.mrf.mxu1  ;;  %v747_v24 = vadd.f32 %v746_v41, %v653_v33 }
 0x322   : > { %v748_v42 = vpop.f32.mrf.mxu0 }
 0x323   : > { %v1973_v43 = vpop.f32.mrf.mxu1 }
 0x324   : > { %v749_v44 = vpop.f32.mrf.mxu0 }
 0x325   : > { %v889_v45 = vpop.f32.mrf.mxu1 }
 0x326   : > { %v848_v46 = vpop.f32.mrf.mxu0  ;;  %v897_v22 = vadd.f32 %v889_v45, %v786_v18 }
 0x327   : > { %v1978_v47 = vpop.f32.mrf.mxu1  ;;  %v895_v25 = vadd.f32 %v848_v46, %v745_v20 }
 0x328   : > { %v850_v48 = vpop.f32.mrf.mxu0 }
 0x329   : > { %v892_v49 = vpop.f32.mrf.mxu1  ;;  %v896_v29 = vadd.f32 %v850_v48, %v747_v24 }
 0x32a   : > { %v852_v50 = vpop.f32.mrf.mxu0 }
 0x32b   : > { %v1979_v51 = vpop.f32.mrf.mxu1 }
 0x32c   : > { %v853_v52 = vpop.f32.mrf.mxu0 }
 0x32d   : > { %v996_v53 = vpop.f32.mrf.mxu1 }
 0x32e   : > { %v955_v54 = vpop.f32.mrf.mxu0  ;;  %v1004_v27 = vadd.f32 %v996_v53, %v897_v22  ;;  %v1544_v53 = vpop.permute.xlu0 %1543 }
 0x32f   : > { %v1984_v55 = vpop.f32.mrf.mxu1  ;;  %v1002_v32 = vadd.f32 %v955_v54, %v895_v25 }
 0x330   : > { %v957_v56 = vpop.f32.mrf.mxu0 }
 0x331   : > { %v999_v57 = vpop.f32.mrf.mxu1  ;;  %v1003_v37 = vadd.f32 %v957_v56, %v896_v29 }
 0x332   : > { %v959_v58 = vpop.f32.mrf.mxu0 }
 0x333   : > { %v1985_v59 = vpop.f32.mrf.mxu1 }
 0x334   : > { %v960_v60 = vpop.f32.mrf.mxu0 }
 0x335   : > { %v1103_v61 = vpop.f32.mrf.mxu1 }
 0x336   : > { %v1062_v62 = vpop.f32.mrf.mxu0  ;;  %v1111_v35 = vadd.f32 %v1103_v61, %v1004_v27 }
 0x337   : > { %v1990_v63 = vpop.f32.mrf.mxu1  ;;  %v1109_v40 = vadd.f32 %v1062_v62, %v1002_v32 }
 0x338   : > { %v1064_v0 = vpop.f32.mrf.mxu0 }
 0x339   : > { %v1106_v1 = vpop.f32.mrf.mxu1  ;;  %v1110_v38 = vadd.f32 %v1064_v0, %v1003_v37 }
 0x33a   : > { %v1066_v2 = vpop.f32.mrf.mxu0 }
 0x33b   : > { %v1991_v3 = vpop.f32.mrf.mxu1 }
 0x33c   : > { %v1067_v4 = vpop.f32.mrf.mxu0 }
 0x33d   : > { %v1210_v5 = vpop.f32.mrf.mxu1 }
 0x33e   : > { %v1169_v6 = vpop.f32.mrf.mxu0  ;;  %v1218_v42 = vadd.f32 %v1210_v5, %v1111_v35  ;;  %v1924_v5 = vld.sshfl [vmem:[%s2309_s25] sm:$0x33 pattern:$0x76325410]  ;;  %s2203_s25 = smov 102  }
 0x33f   : > { %v1996_v7 = vpop.f32.mrf.mxu1  ;;  %v1216_v31 = vadd.f32 %v1169_v6, %v1109_v40  ;;  %v1664_v40 = vpop.permute.xlu0 %1663 }
 0x340   : > { %v1171_v8 = vpop.f32.mrf.mxu0 }
 0x341   : > { %v1213_v9 = vpop.f32.mrf.mxu1  ;;  %v1217_v33 = vadd.f32 %v1171_v8, %v1110_v38 }
 0x342   : > { %v1173_v11 = vpop.f32.mrf.mxu0 }
 0x343   : > { %v1997_v12 = vpop.f32.mrf.mxu1  ;;  %v1555_v11 = vld [vmem:[%s2590_s7] sm:$0xf] }
 0x344   : > { %v1174_v13 = vpop.f32.mrf.mxu0  ;;  %v1674_v12 = vcombine.high %v1924_v5, %v1924_v5 }
 0x345   : > { %v1317_v14 = vpop.f32.mrf.mxu1 }
 0x346   : > { %v1276_v16 = vpop.f32.mrf.mxu0  ;;  %v1325_v43 = vadd.f32 %v1317_v14, %v1218_v42  ;;  %v1679_v14 = vsel %vm480_vm7, %v1924_v5, 0 }
 0x347   : > { %v2002_v17 = vpop.f32.mrf.mxu1  ;;  %v1323_v41 = vadd.f32 %v1276_v16, %v1216_v31  ;;  %v1658_v16 = vld [vmem:[%s2584_s1] sm:$0xf] }
 0x348   : > { %v1278_v19 = vpop.f32.mrf.mxu0  ;;  %v1560_v17 = vpop.permute.xlu1 %1559 }
 0x349   : > { %v1320_v21 = vpop.f32.mrf.mxu1  ;;  %v1324_v48 = vadd.f32 %v1278_v19, %v1217_v33 }
 0x34a   : > { %v1280_v23 = vpop.f32.mrf.mxu0 }
 0x34b   : > { %v2003_v26 = vpop.f32.mrf.mxu1 }
 0x34c   : > { %v1281_v28 = vpop.f32.mrf.mxu0 }
 0x34d   : > { %v1424_v34 = vpop.f32.mrf.mxu1 }
 0x34e   : > { %v1383_v36 = vpop.f32.mrf.mxu0  ;;  %v1432_v46 = vadd.f32 %v1424_v34, %v1325_v43 }
 0x34f   : > { %v2008_v10 = vpop.f32.mrf.mxu1  ;;  %v1430_v49 = vadd.f32 %v1383_v36, %v1323_v41 }
 0x350   : > { %v1385_v30 = vpop.f32.mrf.mxu0 }
 0x351   : > { %v1427_v39 = vpop.f32.mrf.mxu1  ;;  %v1431_v54 = vadd.f32 %v1385_v30, %v1324_v48 }
 0x352   : > { %v1387_v44 = vpop.f32.mrf.mxu0 }
 0x353   : > { %v2009_v45 = vpop.f32.mrf.mxu1 }
 0x354   : > { %v1388_v47 = vpop.f32.mrf.mxu0 }
 0x355   : > { %v1531_v50 = vpop.f32.mrf.mxu1 }
 0x356   : > { %v1539_v51 = vadd.f32 %v1531_v50, %v1432_v46  ;;  %v1490_v52 = vpop.f32.mrf.mxu0 }
 0x357   : > { %v1537_v55 = vadd.f32 %v1490_v52, %v1430_v49  ;;  %v2014_v56 = vpop.f32.mrf.mxu1 }
 0x358   : > { %v1548_v57 = vadd.f32 %v1544_v53, %v1539_v51  ;;  %v1492_v58 = vpop.f32.mrf.mxu0 }
 0x359   : > { %v1546_v59 = vadd.f32 %v1544_v53, %v1537_v55  ;;  %v1538_v60 = vadd.f32 %v1492_v58, %v1431_v54  ;;  %v1534_v61 = vpop.f32.mrf.mxu1 }
 0x35a   : > { %v1551_v62 = vmax.f32 %v1548_v57, 0.0  ;;  %v1494_v63 = vpop.f32.mrf.mxu0 }
 0x35b   : > { %v1549_v0 = vmax.f32 %v1546_v59, 0.0  ;;  %v1547_v1 = vadd.f32 %v1544_v53, %v1538_v60  ;;  %v2015_v2 = vpop.f32.mrf.mxu1 }
 0x35c   : > { %v1554_v3 = vpack.c.bf16 %v1551_v62, %v1551_v62  ;;  %v1495_v4 = vpop.f32.mrf.mxu0 }
 0x35d   : > { %v1552_v6 = vpack.c.bf16 %v1549_v0, %v1549_v0  ;;  %v1550_v7 = vmax.f32 %v1547_v1, 0.0 }
 0x35e   : > { %v1572_v8 = vsel %vm607_vm9, %v1554_v3, 0 }
 0x35f   : > { %v1553_v9 = vpack.c.bf16 %v1550_v7, %v1550_v7  ;;  %2017 = vmatpush3.bf16.msra.mxu1 %v1572_v8  ;;  %v1566_v13 = vsel %vm607_vm9, %v1552_v6, 0 }
 0x361   : > { %1921 = vmatprep.subr.msk.bf16.mxu0 %vm607_vm9, %v1553_v9 }
 0x362   : > { %1589 = vmatpush1.bf16.msra.mxu0 %v1566_v13  ;;  %2019 = vmatmul.mubr.msk.bf16.vlgmr.msra.gmra.mxu1 %vm421_vm0, %v1555_v11 }
 0x363   : > { %1925 = vmatprep.subr.msk.bf16.mxu0 %vm480_vm7, %v1674_v12 }
 0x365   : > { %1922 = vmatmul.mubr.msk.bf16.vlgmr.msra.gmra.mxu0 %vm421_vm0, %v1555_v11  ;;  %vm1783_vm0 = vcmask 130048  }
 0x366   : > { %1699 = vmatpush1.bf16.msra.mxu0 %v1679_v14  ;;  %1716 = vmatprep.mubr.bf16.mxu0 %v2182_v15 }
 0x36d   : > { %1926 = vmatmul.mubr.msk.bf16.vlgmr.msra.gmra.mxu0 %vm476_vm15, %v1658_v16 }
 0x422   : > { %v1649_v18 = vpop.f32.mrf.mxu1 }
 0x423   : > { %v1650_v19 = vadd.f32 %v1649_v18, %v1560_v17 }
 0x424   : > { %v2020_v20 = vpop.f32.mrf.mxu1 }
 0x425   : > { %v1608_v21 = vpop.f32.mrf.mxu0  ;;  %v1657_v22 = vmax.f32 %v1650_v19, 0.0 }
 0x426   : > { %v1609_v23 = vadd.f32 %v1608_v21, %v1560_v17  ;;  %v1652_v24 = vpop.f32.mrf.mxu1 }
 0x427   : > { %1775 = vrot.lane.b32.xlu1 %v1657_v22, %s2200_s28  ;;  %v1610_v25 = vpop.f32.mrf.mxu0 }
 0x428   : > { %v1655_v26 = vmax.f32 %v1609_v23, 0.0  ;;  %v2021_v27 = vpop.f32.mrf.mxu1  ;;  %v1611_v29 = vadd.f32 %v1610_v25, %v1560_v17 }
 0x429   : > { %v1612_v15 = vpop.f32.mrf.mxu0 }
 0x42a   : > { %1731 = vrot.lane.b32.xlu0 %v1655_v26, %s2188_s29  ;;  %v1656_v35 = vmax.f32 %v1611_v29, 0.0  ;;  %s2604_s29 = smov 108  }
 0x42b   : > { %v1613_v28 = vpop.f32.mrf.mxu0  ;;  %1728 = vrot.lane.b32.xlu1 %v1655_v26, %s2186_s27  ;;  %s2201_s27 = smov 106  }
 0x42d   : > { %v1718_v32 = vpop.f32.mrf.mxu0 }
 0x42e   : > { %1734 = vrot.lane.b32.xlu0 %v1655_v26, %s2190_s16  ;;  %s2202_s16 = smov 104   ;;  %v1719_v53 = vadd.f32 %v1718_v32, %v1664_v40 }
 0x42f   : > { %v1720_v34 = vpop.f32.mrf.mxu0  ;;  %1747 = vrot.lane.b32.xlu1 %v1655_v26, %s2198_s17 }
 0x430   : > { %v1721_v56 = vadd.f32 %v1720_v34, %v1664_v40  ;;  %v1725_v62 = vmax.f32 %v1719_v53, 0.0 }
 0x431   : > { %v1722_v36 = vpop.f32.mrf.mxu0 }
 0x432   : > { %1737 = vrot.lane.b32.xlu0 %v1655_v26, %s2192_s21  ;;  %s2204_s21 = smov 98   ;;  %v1726_v1 = vmax.f32 %v1721_v56, 0.0 }
 0x433   : > { %1757 = vrot.lane.b32.xlu1 %v1656_v35, %s2602_s23  ;;  %v1723_v37 = vpop.f32.mrf.mxu0 }
 0x436   : > { %1740 = vrot.lane.b32.xlu0 %v1655_v26, %s2603_s26 }
 0x437   : > { %1760 = vrot.lane.b32.xlu1 %v1656_v35, %s2604_s29 }
 0x43a   : > { %1743 = vrot.lane.b32.xlu0 %v1655_v26, %s2605_s14  ;;  %s2546_s14 = scalar_lea.hbm %s2592_s9, %s1933_s22 }
 0x43b   : > { %1763 = vrot.lane.b32.xlu1 %v1656_v35, %s2201_s27 }
 0x43e   : > { %1754 = vrot.lane.b32.xlu0 %v1656_v35, %s2199_s24  ;;  %s323_s24 = sand.u32 1, %s2155_s10  }
 0x43f   : > { %1766 = vrot.lane.b32.xlu1 %v1656_v35, %s2202_s16  ;;  %s1809_s13 = scalar_lea.sflag [#allocation3], %s323_s24  ;;  %s2205_s16 = smov [#allocation2]  }
 0x442   : > { %1773 = vrot.lane.b32.xlu0 %v1656_v35, %s2200_s28 }
 0x443   : > { %1769 = vrot.lane.b32.xlu1 %v1656_v35, %s2203_s25  ;;  %s2107_s25 = sshll.u32 %s2205_s16, 4  ;;  %s2108_s25 = int_to_ptr.vmem [resolvable:$false] %s2107_s25 }
 0x446   : > { %1749 = vrot.lane.b32.xlu0 %v1656_v35, %s2198_s17  ;;  %s1886_s17 = sshll.u32 %s323_s24, 4 }
 0x447   : > { %1780 = vrot.lane.b32.xlu1 %v1657_v22, %s2204_s21  ;;  %s325_s28 = scalar_lea.vmem [#allocation2], %s1886_s17  ;;  %s2109_s21 = scalar_lea.vmem %s2108_s25, 512 }
 0x448   : > { %s1823_s23 = sshll.u32 %s325_s28, 4  ;;  %s1824_s23 = int_to_ptr.vmem [resolvable:$true] %s1823_s23 }
 0x449   : > { %s2103_s27 = scalar_lea.vmem %s1824_s23, 256  ;;  %p2110_p0 = scmp.lt.s32.totalorder %s1824_s23, %s2108_s25 }
 0x44a   : > { %p2104_p11 = scmp.ne.s32.totalorder %s1824_s23, %s2103_s27  ;;  %p2111_p1 = scmp.lt.s32.totalorder %s2109_s21, %s2103_s27 }
 0x44c   : > { %p2105_p12 = pnand %p2104_p11, %p2294_p5  ;;  %p2112_p2 = por %p2111_p1, %p2110_p0 }
 0x44e   : > { %p2106_p13 = pneg %p2105_p12 }
 0x450   : > { %p2113_p3 = pnand %p2112_p2, %p2106_p13 }
 0x499   : > { %v1776_v10 = vpop.permute.xlu1 %1775 }
 0x49c   : > { %v1732_v42 = vpop.permute.xlu0 %1731 }
 0x49d   : > { %v1729_v30 = vpop.permute.xlu1 %1728 }
 0x49e   : > { %v1784_v46 = vsel %vm1783_vm0, %v1655_v26, %v1729_v30 }
 0x49f   : > { %v1786_v51 = vsel %vm1785_vm10, %v1784_v46, %v1732_v42 }
 0x4a0   : > { %v1735_v38 = vpop.permute.xlu0 %1734 }
 0x4a1   : > { %v1748_v31 = vpop.permute.xlu1 %1747  ;;  %v1788_v58 = vsel %vm1787_vm13, %v1786_v51, %v1735_v38 }
 0x4a4   : > { %v1738_v39 = vpop.permute.xlu0 %1737 }
 0x4a5   : > { %v1758_v43 = vpop.permute.xlu1 %1757  ;;  %v1790_v61 = vsel %vm1789_vm14, %v1788_v58, %v1738_v39 }
 0x4a8   : > { %v1741_v44 = vpop.permute.xlu0 %1740 }
 0x4a9   : > { %v1761_v33 = vpop.permute.xlu1 %1760  ;;  %v1792_v63 = vsel %vm1791_vm1, %v1790_v61, %v1741_v44 }
 0x4ac   : > { %v1744_v41 = vpop.permute.xlu0 %1743 }
 0x4ad   : > { %v1764_v45 = vpop.permute.xlu1 %1763  ;;  %v1794_v2 = vsel %vm1793_vm2, %v1792_v63, %v1744_v41 }
 0x4b0   : > { %v1755_v47 = vpop.permute.xlu0 %1754 }
 0x4b1   : > { %v1797_v48 = vsel %vm1783_vm0, %v1755_v47, %v1758_v43  ;;  %v1767_v49 = vpop.permute.xlu1 %1766 }
 0x4b2   : > { %v1798_v50 = vsel %vm1785_vm10, %v1797_v48, %v1761_v33 }
 0x4b3   : > { %v1799_v52 = vsel %vm1787_vm13, %v1798_v50, %v1764_v45 }
 0x4b4   : > { %v1800_v54 = vsel %vm1789_vm14, %v1799_v52, %v1767_v49  ;;  %v1774_v55 = vpop.permute.xlu0 %1773 }
 0x4b5   : > { %v1770_v57 = vpop.permute.xlu1 %1769  ;;  %v1778_v59 = vsel %vm1777_vm8, %v1774_v55, %v1776_v10 }
 0x4b6   : > { %v1801_v60 = vsel %vm1791_vm1, %v1800_v54, %v1770_v57 }
 0x4b7   : > { %v1802_v4 = vsel %vm1793_vm2, %v1801_v60, %v1778_v59 }
 0x4b8   : > { %v1750_v0 = vpop.permute.xlu0 %1749 }
 0x4b9   : > { %v1752_v3 = vsel %vm1751_vm3, %v1748_v31, %v1750_v0  ;;  %v1781_v5 = vpop.permute.xlu1 %1780 }
 0x4ba   : > { %v1796_v6 = vsel %vm1795_vm4, %v1794_v2, %v1752_v3  ;;  %v1803_v7 = vsel %vm1795_vm4, %v1802_v4, %v1781_v5 }
 0x4bb   : > { %v1804_v8 = vadd.f32 %v1796_v6, %v1725_v62  ;;  %v1805_v9 = vadd.f32 %v1803_v7, %v1726_v1 }
 0x4bd   : > { %1807 = vst [vmem:[%s325_s28 + $0x8] sm:$0xff] %v1805_v9  ;;  %1806 = vst [vmem:[%s325_s28] sm:$0xff] %v1804_v8 }
 0x4be   : > { %2116 = shalt.err (!%p2113_p3)
}
 0x4bf   : > { %s2117_s17 = scalar_lea.hbm %s2546_s14, 256  ;;  %s2121_s28 = scalar_lea.hbm %s2592_s9, 512 }
 0x4c0   : > { %p2118_p4 = scmp.ne.s32.totalorder %s2546_s14, %s2117_s17  ;;  %p2122_p9 = scmp.lt.s32.totalorder %s2546_s14, %s2592_s9 }
 0x4c1   : > { %p2123_p10 = scmp.lt.s32.totalorder %s2121_s28, %s2117_s17 }
 0x4c2   : > { %p2119_p7 = pnand %p2118_p4, %p2294_p5 }
 0x4c3   : > { %p2124_p11 = por %p2123_p10, %p2122_p9 }
 0x4c4   : > { %p2120_p8 = pneg %p2119_p7 }
 0x4c6   : > { %p2125_p12 = pnand %p2124_p11, %p2120_p8 }
 0x4c8   : > { %2128 = shalt.err (!%p2125_p12)
}
 0x4c9   : > { %2022 = dma.vmem_to_hbm [thread:$0]  (%p2294_p5), %s1824_s23, 256, %s2546_s14, %s1809_s13  }
 0x4ca PF: > { %p2028_p13 = scmp.ge.s32.totalorder %s2163_s12, 2  ;;  %s1835_s27 = sand.u32 1, %s2151_s30  }
 0x4cb   : > { %s1836_s16 = scalar_lea.sflag [#allocation3], %s1835_s27 }
 0x4cc   : > { %p2025_p0 = pnand %p2028_p13, %p2298_p6 }
 0x4ce   : > { %p2026_p1 = pneg %p2025_p0 }
 0x4d0   : > { %2146 = dma.done.wait (%p2026_p1), %s1836_s16, 256  }
 0x4d1   : > { %2148 = vsyncadd (%p2026_p1), %s1836_s16, 4294967040  ;;  %p19_p2 = scmp.ge.s32.totalorder %s2281_s15, 4   ;;  %s2606_s30 = smov %s2155_s10 }
 0x4d2   : > { %s2607_s10 = smov %s2159_s11  ;;  %s2608_s11 = smov %s2292_s18 }
 0x4d3   : > { %s2609_s12 = smov %s2281_s15  ;;  %21 = sbr.rel (!%p19_p2) target bundleno = 3 (0x3), region = 91 }
 0x4d8   :  { %1841 = vsyncpa [#allocation3], 1 }
 0x4d9   :  { %1843 = vsyncpa [#allocation3 + $0x1], 1 }

</bundles_post_ra>
